<compile_context>
chip_gen: v6e
topology: v6e:2x2x1
jax: 0.10.0
libtpu: 0.0.40
codegen_flags: <defaults>
</compile_context>

<pallas_src>
import functools
import math

import jax
import jax.numpy as jnp
from jax import lax
from jax.experimental import pallas as pl
from jax.experimental.pallas import tpu as pltpu


LN_EPS = 1e-5       # nn.LayerNorm default (reference Encoder impl unknown)
NEG_INF = -1e9


# ----------------------------------------------------------------------------
# Fused attention sublayer:  h + Wo( MHA( LN(h) ) )          (one grid step / b)
# ----------------------------------------------------------------------------

def _attn_block_kernel(h_ref, bias_ref, g_ref, b_ref, wqkv_ref, bqkv_ref,
                       wo_ref, bo_ref, o_ref, *, n_head, scale, eps):
    h = h_ref[0]                                        # (L, D) f32
    # pre-norm LayerNorm (f32 statistics)
    mu = jnp.mean(h, axis=-1, keepdims=True)
    var = jnp.mean((h - mu) ** 2, axis=-1, keepdims=True)
    hn = (h - mu) * lax.rsqrt(var + eps) * g_ref[...] + b_ref[...]

    # merged Q/K/V projection: one MXU pass with N = 3*D (bf16 in, f32 acc)
    qkv = jnp.dot(hn.astype(jnp.bfloat16), wqkv_ref[...],
                  preferred_element_type=jnp.float32) + bqkv_ref[...]

    L, D = h.shape
    Dh = D // n_head
    bias = bias_ref[0]                                  # (1, L) additive 0 / -1e9

    out = jnp.zeros((L, D), jnp.float32)
    for hh in range(n_head):                            # unrolled; all data stays in vregs
        q = qkv[:, hh * Dh:(hh + 1) * Dh]
        k = qkv[:, D + hh * Dh: D + (hh + 1) * Dh]
        v = qkv[:, 2 * D + hh * Dh: 2 * D + (hh + 1) * Dh]
        # q @ k^T without an explicit transpose (contract last dims)
        s = lax.dot_general(q.astype(jnp.bfloat16), k.astype(jnp.bfloat16),
                            (((1,), (1,)), ((), ())),
                            preferred_element_type=jnp.float32)
        s = s * scale + bias
        s = s - jnp.max(s, axis=-1, keepdims=True)
        p = jnp.exp(s)
        p = p * pl.reciprocal(jnp.sum(p, axis=-1, keepdims=True), approx=True)
        attn_h = jnp.dot(p.astype(jnp.bfloat16), v.astype(jnp.bfloat16),
                         preferred_element_type=jnp.float32)      # (L, Dh)
        # per-head slice of the output projection (== concat(heads) @ Wo)
        out = out + jnp.dot(attn_h.astype(jnp.bfloat16), wo_ref[hh],
                            preferred_element_type=jnp.float32)   # (L, D)

    o_ref[0] = h + out + bo_ref[...]                    # residual fused in-kernel


def attn_sublayer(h, bias, blk, n_head):
    B, L, D = h.shape
    scale = 1.0 / math.sqrt(D // n_head)
    kern = functools.partial(_attn_block_kernel, n_head=n_head, scale=scale,
                             eps=LN_EPS)
    return pl.pallas_call(
        kern,
        out_shape=jax.ShapeDtypeStruct((B, L, D), jnp.float32),
        grid=(B,),
        in_specs=[
            pl.BlockSpec((1, L, D), lambda b: (b, 0, 0)),
            pl.BlockSpec((1, 1, L), lambda b: (b, 0, 0)),
            pl.BlockSpec((1, D), lambda b: (0, 0)),
            pl.BlockSpec((1, D), lambda b: (0, 0)),
            pl.BlockSpec((D, 3 * D), lambda b: (0, 0)),
            pl.BlockSpec((1, 3 * D), lambda b: (0, 0)),
            pl.BlockSpec((n_head, D // n_head, D), lambda b: (0, 0, 0)),
            pl.BlockSpec((1, D), lambda b: (0, 0)),
        ],
        out_specs=pl.BlockSpec((1, L, D), lambda b: (b, 0, 0)),
        compiler_params=pltpu.CompilerParams(dimension_semantics=("parallel",)),
    )(h, bias, blk["ln1_g"], blk["ln1_b"], blk["wqkv"], blk["bqkv"],
      blk["wo3"], blk["bo"])


# ----------------------------------------------------------------------------
# Fused FFN sublayer:  h + W2( ReLU( W1( LN(h) ) ) )          (one grid step / b)
# ----------------------------------------------------------------------------

def _ffn_block_kernel(h_ref, g_ref, b_ref, w1_ref, b1_ref, w2_ref, b2_ref,
                      o_ref, *, eps):
    h = h_ref[0]                                        # (L, D) f32
    mu = jnp.mean(h, axis=-1, keepdims=True)
    var = jnp.mean((h - mu) ** 2, axis=-1, keepdims=True)
    hn = (h - mu) * lax.rsqrt(var + eps) * g_ref[...] + b_ref[...]

    f = jnp.dot(hn.astype(jnp.bfloat16), w1_ref[...],
                preferred_element_type=jnp.float32) + b1_ref[...]
    f = jnp.maximum(f, 0.0)
    f2 = jnp.dot(f.astype(jnp.bfloat16), w2_ref[...],
                 preferred_element_type=jnp.float32) + b2_ref[...]
    o_ref[0] = h + f2                                   # residual fused in-kernel


def ffn_sublayer(h, blk):
    B, L, D = h.shape
    d_ff = blk["w1"].shape[1]
    kern = functools.partial(_ffn_block_kernel, eps=LN_EPS)
    return pl.pallas_call(
        kern,
        out_shape=jax.ShapeDtypeStruct((B, L, D), jnp.float32),
        grid=(B,),
        in_specs=[
            pl.BlockSpec((1, L, D), lambda b: (b, 0, 0)),
            pl.BlockSpec((1, D), lambda b: (0, 0)),
            pl.BlockSpec((1, D), lambda b: (0, 0)),
            pl.BlockSpec((D, d_ff), lambda b: (0, 0)),
            pl.BlockSpec((1, d_ff), lambda b: (0, 0)),
            pl.BlockSpec((d_ff, D), lambda b: (0, 0)),
            pl.BlockSpec((1, D), lambda b: (0, 0)),
        ],
        out_specs=pl.BlockSpec((1, L, D), lambda b: (b, 0, 0)),
        compiler_params=pltpu.CompilerParams(dimension_semantics=("parallel",)),
    )(h, blk["ln2_g"], blk["ln2_b"], blk["w1"], blk["b1"], blk["w2"], blk["b2"])


# ----------------------------------------------------------------------------
# Fused classifier head:  LN(h) -> Linear(L*D, D) -> ReLU -> Linear(D, C)
# The Linear(L*D, D) contraction is tiled over L-chunks (grid axis "arbitrary")
# with an f32 accumulator scratch; fc1 weights are passed as (L, D, D) so no
# in-kernel reshape is needed.
# ----------------------------------------------------------------------------

def _head_kernel(h_ref, g_ref, b_ref, w1_ref, b1_ref, w2_ref, b2_ref,
                 o_ref, acc_ref, *, eps, lc):
    lk = pl.program_id(1)

    @pl.when(lk == 0)
    def _():
        acc_ref[...] = jnp.zeros_like(acc_ref)

    h = h_ref[0]                                        # (lc, D) f32
    mu = jnp.mean(h, axis=-1, keepdims=True)
    var = jnp.mean((h - mu) ** 2, axis=-1, keepdims=True)
    hn = ((h - mu) * lax.rsqrt(var + eps) * g_ref[...] + b_ref[...]
          ).astype(jnp.bfloat16)

    part = jnp.zeros(acc_ref.shape, jnp.float32)
    for l in range(lc):                                 # x_flat @ W1 as sum over rows
        part = part + jnp.dot(hn[l:l + 1, :], w1_ref[l],
                              preferred_element_type=jnp.float32)
    acc_ref[...] += part

    @pl.when(lk == pl.num_programs(1) - 1)
    def _():
        y = jnp.maximum(acc_ref[...] + b1_ref[...], 0.0)
        o_ref[0] = jnp.dot(y.astype(jnp.bfloat16), w2_ref[...],
                           preferred_element_type=jnp.float32) + b2_ref[...]


def classifier_head(h, params):
    B, L, D = h.shape
    C = params["fc2_b"].shape[-1]
    lc = L                                  # single reduction chunk at these sizes
    n_chunks = L // lc
    kern = functools.partial(_head_kernel, eps=LN_EPS, lc=lc)
    out = pl.pallas_call(
        kern,
        out_shape=jax.ShapeDtypeStruct((B, 1, C), jnp.float32),
        grid=(B, n_chunks),
        in_specs=[
            pl.BlockSpec((1, lc, D), lambda b, l: (b, l, 0)),
            pl.BlockSpec((1, D), lambda b, l: (0, 0)),
            pl.BlockSpec((1, D), lambda b, l: (0, 0)),
            pl.BlockSpec((lc, D, D), lambda b, l: (l, 0, 0)),
            pl.BlockSpec((1, D), lambda b, l: (0, 0)),
            pl.BlockSpec((D, C), lambda b, l: (0, 0)),
            pl.BlockSpec((1, C), lambda b, l: (0, 0)),
        ],
        out_specs=pl.BlockSpec((1, 1, C), lambda b, l: (b, 0, 0)),
        scratch_shapes=[pltpu.VMEM((1, D), jnp.float32)],
        compiler_params=pltpu.CompilerParams(
            dimension_semantics=("parallel", "arbitrary")),
    )(h, params["lnf_g"], params["lnf_b"], params["fc1_w3"], params["fc1_b"],
      params["fc2_w"], params["fc2_b"])
    return out.reshape(B, C)


# ----------------------------------------------------------------------------
# Model glue (parameter init, positional encoding, forward composition)
# ----------------------------------------------------------------------------

def sinusoidal_pe(max_len, d_model):
    pos = jnp.arange(max_len, dtype=jnp.float32)[:, None]
    i = jnp.arange(0, d_model, 2, dtype=jnp.float32)
    div = jnp.exp(-math.log(10000.0) * i / d_model)
    pe = jnp.zeros((max_len, d_model), jnp.float32)
    pe = pe.at[:, 0::2].set(jnp.sin(pos * div))
    pe = pe.at[:, 1::2].set(jnp.cos(pos * div))
    return pe


def init_params(key, *, n_dict, n_emb, n_head, n_block, max_len, n_class):
    def nxt():
        nonlocal key
        key, sub = jax.random.split(key)
        return sub

    def dense(shape):
        return jax.random.normal(nxt(), shape, jnp.float32) * 0.02

    d_ff = 4 * n_emb
    dh = n_emb // n_head
    emb = dense((n_dict, n_emb)).at[0].set(0.0)          # padding_idx=0

    blocks = []
    for _ in range(n_block):
        wq, wk, wv = (dense((n_emb, n_emb)) for _ in range(3))
        wo = dense((n_emb, n_emb))
        blocks.append(dict(
            wqkv=jnp.concatenate([wq, wk, wv], axis=1).astype(jnp.bfloat16),
            bqkv=jnp.zeros((1, 3 * n_emb), jnp.float32),
            wo3=wo.reshape(n_head, dh, n_emb).astype(jnp.bfloat16),
            bo=jnp.zeros((1, n_emb), jnp.float32),
            ln1_g=jnp.ones((1, n_emb), jnp.float32),
            ln1_b=jnp.zeros((1, n_emb), jnp.float32),
            ln2_g=jnp.ones((1, n_emb), jnp.float32),
            ln2_b=jnp.zeros((1, n_emb), jnp.float32),
            w1=dense((n_emb, d_ff)).astype(jnp.bfloat16),
            b1=jnp.zeros((1, d_ff), jnp.float32),
            w2=dense((d_ff, n_emb)).astype(jnp.bfloat16),
            b2=jnp.zeros((1, n_emb), jnp.float32),
        ))

    fc1_w = dense((max_len * n_emb, n_emb))
    return dict(
        emb=emb,
        pe=sinusoidal_pe(max_len, n_emb),
        blocks=blocks,
        lnf_g=jnp.ones((1, n_emb), jnp.float32),
        lnf_b=jnp.zeros((1, n_emb), jnp.float32),
        fc1_w3=fc1_w.reshape(max_len, n_emb, n_emb).astype(jnp.bfloat16),
        fc1_b=jnp.zeros((1, n_emb), jnp.float32),
        fc2_w=dense((n_emb, n_class)).astype(jnp.bfloat16),
        fc2_b=jnp.zeros((1, n_class), jnp.float32),
    )


def tb_forward(params, x, x_pre=None, x_alt=None, x_cur=None, seq_lens=None,
               *, n_head):
    # x_pre / x_alt / x_cur / seq_lens are unused by TB.forward (matching torch)
    B, L = x.shape

    # x_mask = (x != 0) -> precomputed additive attention bias (0 / -1e9)
    bias = jnp.where(x != 0, 0.0, NEG_INF).astype(jnp.float32).reshape(B, 1, L)

    # word embedding (padding_idx=0) + sinusoidal PE (XLA gather+add; dropout=id)
    h = jnp.take(params["emb"], x, axis=0) + params["pe"][None, :L, :]

    # transformer encoder: 2 fused Pallas kernels per block
    for blk in params["blocks"]:
        h = attn_sublayer(h, bias, blk, n_head)
        h = ffn_sublayer(h, blk)

    # final LayerNorm + out_fc fused into one kernel (reshape done via (L,D,D)
    # weight layout, no XLA-side flatten of activations)
    return classifier_head(h, params)


# ----------------------------------------------------------------------------
# Main
# ----------------------------------------------------------------------------

if __name__ == "__main__":
    B, L = 2, 8              # batch, max_len
    N_DICT, N_EMB = 20, 32   # token_embeddings.shape
    N_HEAD, N_BLOCK = 4, 2
    N_CLASS = 3

    key = jax.random.PRNGKey(0)
    key, pkey, xkey = jax.random.split(key, 3)

    params = init_params(pkey, n_dict=N_DICT, n_emb=N_EMB, n_head=N_HEAD,
                         n_block=N_BLOCK, max_len=L, n_class=N_CLASS)

    x = jax.random.randint(xkey, (B, L), 1, N_DICT, dtype=jnp.int32)
    x = x.at[1, 6:].set(0)   # some trailing padding in the second sequence

    fwd = jax.jit(functools.partial(tb_forward, n_head=N_HEAD))
    out = fwd(params, x)
    jax.block_until_ready(out)
    assert out.shape == (B, N_CLASS)
    print("KERNEL_OK")
</pallas_src>

<mosaic_0001>
module attributes {stable_mosaic.version = 11 : i64} {
  func.func @_ffn_block_kernel(%arg0: i32, %arg1: memref<1x8x32xf32, #tpu.memory_space<vmem>>, %arg2: memref<1x32xf32, #tpu.memory_space<vmem>>, %arg3: memref<1x32xf32, #tpu.memory_space<vmem>>, %arg4: memref<32x128xbf16, #tpu.memory_space<vmem>>, %arg5: memref<1x128xf32, #tpu.memory_space<vmem>>, %arg6: memref<128x32xbf16, #tpu.memory_space<vmem>>, %arg7: memref<1x32xf32, #tpu.memory_space<vmem>>, %arg8: memref<1x8x32xf32, #tpu.memory_space<vmem>>) attributes {dimension_semantics = [#tpu.dimension_semantics<parallel>], iteration_bounds = array<i64: 2>, scalar_prefetch = 0 : i64, scratch_operands = 0 : i64, tpu.core_type = #tpu.core_type<tc>, window_params = [{transform_indices = @transform_0, window_bounds = array<i64: 1, 8, 32>}, {pipeline_mode = #tpu.pipeline_mode<synchronous>, transform_indices = @transform_1, window_bounds = array<i64: 1, 32>}, {pipeline_mode = #tpu.pipeline_mode<synchronous>, transform_indices = @transform_2, window_bounds = array<i64: 1, 32>}, {pipeline_mode = #tpu.pipeline_mode<synchronous>, transform_indices = @transform_3, window_bounds = array<i64: 32, 128>}, {pipeline_mode = #tpu.pipeline_mode<synchronous>, transform_indices = @transform_4, window_bounds = array<i64: 1, 128>}, {pipeline_mode = #tpu.pipeline_mode<synchronous>, transform_indices = @transform_5, window_bounds = array<i64: 128, 32>}, {pipeline_mode = #tpu.pipeline_mode<synchronous>, transform_indices = @transform_6, window_bounds = array<i64: 1, 32>}, {transform_indices = @transform_7, window_bounds = array<i64: 1, 8, 32>}]} {
    %c0 = arith.constant 0 : index
    %c0_0 = arith.constant 0 : index
    %c0_1 = arith.constant 0 : index
    %0 = vector.load %arg1[%c0, %c0_0, %c0_1] : memref<1x8x32xf32, #tpu.memory_space<vmem>>, vector<1x8x32xf32>
    %1 = vector.shape_cast %0 : vector<1x8x32xf32> to vector<8x32xf32>
    %cst = arith.constant dense<0.000000e+00> : vector<8xf32>
    %2 = vector.multi_reduction <add>, %1, %cst [1] : vector<8x32xf32> to vector<8xf32>
    %3 = vector.shape_cast %2 : vector<8xf32> to vector<8x1xf32>
    %cst_2 = arith.constant 3.200000e+01 : f32
    %4 = vector.broadcast %cst_2 : f32 to vector<8x1xf32>
    %5 = arith.divf %3, %4 : vector<8x1xf32>
    %6 = vector.broadcast %5 : vector<8x1xf32> to vector<8x32xf32>
    %7 = arith.subf %1, %6 : vector<8x32xf32>
    %8 = arith.mulf %7, %7 : vector<8x32xf32>
    %cst_3 = arith.constant dense<0.000000e+00> : vector<8xf32>
    %9 = vector.multi_reduction <add>, %8, %cst_3 [1] : vector<8x32xf32> to vector<8xf32>
    %10 = vector.shape_cast %9 : vector<8xf32> to vector<8x1xf32>
    %cst_4 = arith.constant 3.200000e+01 : f32
    %11 = vector.broadcast %cst_4 : f32 to vector<8x1xf32>
    %12 = arith.divf %10, %11 : vector<8x1xf32>
    %13 = vector.broadcast %5 : vector<8x1xf32> to vector<8x32xf32>
    %14 = arith.subf %1, %13 : vector<8x32xf32>
    %cst_5 = arith.constant 9.99999974E-6 : f32
    %15 = vector.broadcast %cst_5 : f32 to vector<8x1xf32>
    %16 = arith.addf %12, %15 : vector<8x1xf32>
    %17 = math.rsqrt %16 : vector<8x1xf32>
    %18 = vector.broadcast %17 : vector<8x1xf32> to vector<8x32xf32>
    %19 = arith.mulf %14, %18 : vector<8x32xf32>
    %c0_6 = arith.constant 0 : index
    %c0_7 = arith.constant 0 : index
    %20 = vector.load %arg2[%c0_6, %c0_7] : memref<1x32xf32, #tpu.memory_space<vmem>>, vector<1x32xf32>
    %21 = vector.broadcast %20 : vector<1x32xf32> to vector<8x32xf32>
    %22 = arith.mulf %19, %21 : vector<8x32xf32>
    %c0_8 = arith.constant 0 : index
    %c0_9 = arith.constant 0 : index
    %23 = vector.load %arg3[%c0_8, %c0_9] : memref<1x32xf32, #tpu.memory_space<vmem>>, vector<1x32xf32>
    %24 = vector.broadcast %23 : vector<1x32xf32> to vector<8x32xf32>
    %25 = arith.addf %22, %24 : vector<8x32xf32>
    %26 = arith.truncf %25 : vector<8x32xf32> to vector<8x32xbf16>
    %c0_10 = arith.constant 0 : index
    %c0_11 = arith.constant 0 : index
    %27 = vector.load %arg4[%c0_10, %c0_11] : memref<32x128xbf16, #tpu.memory_space<vmem>>, vector<32x128xbf16>
    %cst_12 = arith.constant dense<0.000000e+00> : vector<8x128xf32>
    %28 = tpu.matmul %26, %27, %cst_12 {dimension_numbers = #tpu.dot_dimension_numbers<[1], [0], [0], [1], [0, 0, 1, 1], [], []>} : vector<8x32xbf16>, vector<32x128xbf16>, vector<8x128xf32> -> vector<8x128xf32>
    %c0_13 = arith.constant 0 : index
    %c0_14 = arith.constant 0 : index
    %29 = vector.load %arg5[%c0_13, %c0_14] : memref<1x128xf32, #tpu.memory_space<vmem>>, vector<1x128xf32>
    %30 = vector.broadcast %29 : vector<1x128xf32> to vector<8x128xf32>
    %31 = arith.addf %28, %30 : vector<8x128xf32>
    %cst_15 = arith.constant 0.000000e+00 : f32
    %32 = vector.broadcast %cst_15 : f32 to vector<8x128xf32>
    %33 = arith.maximumf %31, %32 : vector<8x128xf32>
    %34 = arith.truncf %33 : vector<8x128xf32> to vector<8x128xbf16>
    %c0_16 = arith.constant 0 : index
    %c0_17 = arith.constant 0 : index
    %35 = vector.load %arg6[%c0_16, %c0_17] : memref<128x32xbf16, #tpu.memory_space<vmem>>, vector<128x32xbf16>
    %cst_18 = arith.constant dense<0.000000e+00> : vector<8x32xf32>
    %36 = tpu.matmul %34, %35, %cst_18 {dimension_numbers = #tpu.dot_dimension_numbers<[1], [0], [0], [1], [0, 0, 1, 1], [], []>} : vector<8x128xbf16>, vector<128x32xbf16>, vector<8x32xf32> -> vector<8x32xf32>
    %c0_19 = arith.constant 0 : index
    %c0_20 = arith.constant 0 : index
    %37 = vector.load %arg7[%c0_19, %c0_20] : memref<1x32xf32, #tpu.memory_space<vmem>>, vector<1x32xf32>
    %38 = vector.broadcast %37 : vector<1x32xf32> to vector<8x32xf32>
    %39 = arith.addf %36, %38 : vector<8x32xf32>
    %40 = arith.addf %1, %39 : vector<8x32xf32>
    %c0_21 = arith.constant 0 : index
    %c0_22 = arith.constant 0 : index
    %c0_23 = arith.constant 0 : index
    %41 = vector.load %arg8[%c0_21, %c0_22, %c0_23] : memref<1x8x32xf32, #tpu.memory_space<vmem>>, vector<1x8x32xf32>
    %42 = vector.shape_cast %41 : vector<1x8x32xf32> to vector<8x32xf32>
    %43 = vector.shape_cast %40 : vector<8x32xf32> to vector<1x8x32xf32>
    tpu.vector_store %arg8[%c0_21, %c0_22, %c0_23], %43 {strides = array<i32>} : memref<1x8x32xf32, #tpu.memory_space<vmem>>, vector<1x8x32xf32>,
    return
  }
  func.func @transform_0(%arg0: i32) -> (i32, i32, i32) {
    %c0_i32 = arith.constant 0 : i32
    %c0_i32_0 = arith.constant 0 : i32
    %c0_i32_1 = arith.constant 0 : i32
    return %arg0, %c0_i32, %c0_i32_0 : i32, i32, i32
  }
  func.func @transform_1(%arg0: i32) -> (i32, i32) {
    %c0_i32 = arith.constant 0 : i32
    %c0_i32_0 = arith.constant 0 : i32
    %c0_i32_1 = arith.constant 0 : i32
    return %c0_i32, %c0_i32_0 : i32, i32
  }
  func.func @transform_2(%arg0: i32) -> (i32, i32) {
    %c0_i32 = arith.constant 0 : i32
    %c0_i32_0 = arith.constant 0 : i32
    %c0_i32_1 = arith.constant 0 : i32
    return %c0_i32, %c0_i32_0 : i32, i32
  }
  func.func @transform_3(%arg0: i32) -> (i32, i32) {
    %c0_i32 = arith.constant 0 : i32
    %c0_i32_0 = arith.constant 0 : i32
    %c0_i32_1 = arith.constant 0 : i32
    return %c0_i32, %c0_i32_0 : i32, i32
  }
  func.func @transform_4(%arg0: i32) -> (i32, i32) {
    %c0_i32 = arith.constant 0 : i32
    %c0_i32_0 = arith.constant 0 : i32
    %c0_i32_1 = arith.constant 0 : i32
    return %c0_i32, %c0_i32_0 : i32, i32
  }
  func.func @transform_5(%arg0: i32) -> (i32, i32) {
    %c0_i32 = arith.constant 0 : i32
    %c0_i32_0 = arith.constant 0 : i32
    %c0_i32_1 = arith.constant 0 : i32
    return %c0_i32, %c0_i32_0 : i32, i32
  }
  func.func @transform_6(%arg0: i32) -> (i32, i32) {
    %c0_i32 = arith.constant 0 : i32
    %c0_i32_0 = arith.constant 0 : i32
    %c0_i32_1 = arith.constant 0 : i32
    return %c0_i32, %c0_i32_0 : i32, i32
  }
  func.func @transform_7(%arg0: i32) -> (i32, i32, i32) {
    %c0_i32 = arith.constant 0 : i32
    %c0_i32_0 = arith.constant 0 : i32
    %c0_i32_1 = arith.constant 0 : i32
    return %arg0, %c0_i32, %c0_i32_0 : i32, i32, i32
  }
}

module attributes {stable_mosaic.version = 11 : i64} {
  func.func @_head_kernel(%arg0: i32, %arg1: i32, %arg2: memref<1x8x32xf32, #tpu.memory_space<vmem>>, %arg3: memref<1x32xf32, #tpu.memory_space<vmem>>, %arg4: memref<1x32xf32, #tpu.memory_space<vmem>>, %arg5: memref<8x32x32xbf16, #tpu.memory_space<vmem>>, %arg6: memref<1x32xf32, #tpu.memory_space<vmem>>, %arg7: memref<32x3xbf16, #tpu.memory_space<vmem>>, %arg8: memref<1x3xf32, #tpu.memory_space<vmem>>, %arg9: memref<1x1x3xf32, #tpu.memory_space<vmem>>, %arg10: memref<1x32xf32, #tpu.memory_space<vmem>>) attributes {dimension_semantics = [#tpu.dimension_semantics<parallel>, #tpu.dimension_semantics<arbitrary>], iteration_bounds = array<i64: 2, 1>, scalar_prefetch = 0 : i64, scratch_operands = 1 : i64, tpu.core_type = #tpu.core_type<tc>, window_params = [{transform_indices = @transform_0, window_bounds = array<i64: 1, 8, 32>}, {pipeline_mode = #tpu.pipeline_mode<synchronous>, transform_indices = @transform_1, window_bounds = array<i64: 1, 32>}, {pipeline_mode = #tpu.pipeline_mode<synchronous>, transform_indices = @transform_2, window_bounds = array<i64: 1, 32>}, {transform_indices = @transform_3, window_bounds = array<i64: 8, 32, 32>}, {pipeline_mode = #tpu.pipeline_mode<synchronous>, transform_indices = @transform_4, window_bounds = array<i64: 1, 32>}, {pipeline_mode = #tpu.pipeline_mode<synchronous>, transform_indices = @transform_5, window_bounds = array<i64: 32, 3>}, {pipeline_mode = #tpu.pipeline_mode<synchronous>, transform_indices = @transform_6, window_bounds = array<i64: 1, 3>}, {transform_indices = @transform_7, window_bounds = array<i64: 1, 1, 3>}]} {
    %c0_i32 = arith.constant 0 : i32
    %0 = arith.cmpi eq, %arg1, %c0_i32 : i32
    %1 = arith.extui %0 : i1 to i32
    %c0_i32_0 = arith.constant 0 : i32
    %2 = arith.cmpi ne, %1, %c0_i32_0 : i32
    scf.if %2 {
      %cst_43 = arith.constant 0.000000e+00 : f32
      %77 = vector.broadcast %cst_43 : f32 to vector<1x32xf32>
      %c0_44 = arith.constant 0 : index
      %c0_45 = arith.constant 0 : index
      %78 = vector.load %arg10[%c0_44, %c0_45] : memref<1x32xf32, #tpu.memory_space<vmem>>, vector<1x32xf32>
      tpu.vector_store %arg10[%c0_44, %c0_45], %77 {strides = array<i32>} : memref<1x32xf32, #tpu.memory_space<vmem>>, vector<1x32xf32>,
    } else {
    }
    %c0 = arith.constant 0 : index
    %c0_1 = arith.constant 0 : index
    %c0_2 = arith.constant 0 : index
    %3 = vector.load %arg2[%c0, %c0_1, %c0_2] : memref<1x8x32xf32, #tpu.memory_space<vmem>>, vector<1x8x32xf32>
    %4 = vector.shape_cast %3 : vector<1x8x32xf32> to vector<8x32xf32>
    %cst = arith.constant dense<0.000000e+00> : vector<8xf32>
    %5 = vector.multi_reduction <add>, %4, %cst [1] : vector<8x32xf32> to vector<8xf32>
    %6 = vector.shape_cast %5 : vector<8xf32> to vector<8x1xf32>
    %cst_3 = arith.constant 3.200000e+01 : f32
    %7 = vector.broadcast %cst_3 : f32 to vector<8x1xf32>
    %8 = arith.divf %6, %7 : vector<8x1xf32>
    %9 = vector.broadcast %8 : vector<8x1xf32> to vector<8x32xf32>
    %10 = arith.subf %4, %9 : vector<8x32xf32>
    %11 = arith.mulf %10, %10 : vector<8x32xf32>
    %cst_4 = arith.constant dense<0.000000e+00> : vector<8xf32>
    %12 = vector.multi_reduction <add>, %11, %cst_4 [1] : vector<8x32xf32> to vector<8xf32>
    %13 = vector.shape_cast %12 : vector<8xf32> to vector<8x1xf32>
    %cst_5 = arith.constant 3.200000e+01 : f32
    %14 = vector.broadcast %cst_5 : f32 to vector<8x1xf32>
    %15 = arith.divf %13, %14 : vector<8x1xf32>
    %16 = vector.broadcast %8 : vector<8x1xf32> to vector<8x32xf32>
    %17 = arith.subf %4, %16 : vector<8x32xf32>
    %cst_6 = arith.constant 9.99999974E-6 : f32
    %18 = vector.broadcast %cst_6 : f32 to vector<8x1xf32>
    %19 = arith.addf %15, %18 : vector<8x1xf32>
    %20 = math.rsqrt %19 : vector<8x1xf32>
    %21 = vector.broadcast %20 : vector<8x1xf32> to vector<8x32xf32>
    %22 = arith.mulf %17, %21 : vector<8x32xf32>
    %c0_7 = arith.constant 0 : index
    %c0_8 = arith.constant 0 : index
    %23 = vector.load %arg3[%c0_7, %c0_8] : memref<1x32xf32, #tpu.memory_space<vmem>>, vector<1x32xf32>
    %24 = vector.broadcast %23 : vector<1x32xf32> to vector<8x32xf32>
    %25 = arith.mulf %22, %24 : vector<8x32xf32>
    %c0_9 = arith.constant 0 : index
    %c0_10 = arith.constant 0 : index
    %26 = vector.load %arg4[%c0_9, %c0_10] : memref<1x32xf32, #tpu.memory_space<vmem>>, vector<1x32xf32>
    %27 = vector.broadcast %26 : vector<1x32xf32> to vector<8x32xf32>
    %28 = arith.addf %25, %27 : vector<8x32xf32>
    %29 = arith.truncf %28 : vector<8x32xf32> to vector<8x32xbf16>
    %cst_11 = arith.constant 0.000000e+00 : f32
    %30 = vector.broadcast %cst_11 : f32 to vector<1x32xf32>
    %31 = vector.extract_strided_slice %29 {offsets = [0, 0], sizes = [1, 32], strides = [1, 1]} : vector<8x32xbf16> to vector<1x32xbf16>
    %c0_12 = arith.constant 0 : index
    %c0_13 = arith.constant 0 : index
    %c0_14 = arith.constant 0 : index
    %32 = vector.load %arg5[%c0_12, %c0_13, %c0_14] : memref<8x32x32xbf16, #tpu.memory_space<vmem>>, vector<1x32x32xbf16>
    %33 = vector.shape_cast %32 : vector<1x32x32xbf16> to vector<32x32xbf16>
    %cst_15 = arith.constant dense<0.000000e+00> : vector<1x32xf32>
    %34 = tpu.matmul %31, %33, %cst_15 {dimension_numbers = #tpu.dot_dimension_numbers<[1], [0], [0], [1], [0, 0, 1, 1], [], []>} : vector<1x32xbf16>, vector<32x32xbf16>, vector<1x32xf32> -> vector<1x32xf32>
    %35 = arith.addf %30, %34 : vector<1x32xf32>
    %36 = vector.extract_strided_slice %29 {offsets = [1, 0], sizes = [1, 32], strides = [1, 1]} : vector<8x32xbf16> to vector<1x32xbf16>
    %c1 = arith.constant 1 : index
    %c0_16 = arith.constant 0 : index
    %c0_17 = arith.constant 0 : index
    %37 = vector.load %arg5[%c1, %c0_16, %c0_17] : memref<8x32x32xbf16, #tpu.memory_space<vmem>>, vector<1x32x32xbf16>
    %38 = vector.shape_cast %37 : vector<1x32x32xbf16> to vector<32x32xbf16>
    %cst_18 = arith.constant dense<0.000000e+00> : vector<1x32xf32>
    %39 = tpu.matmul %36, %38, %cst_18 {dimension_numbers = #tpu.dot_dimension_numbers<[1], [0], [0], [1], [0, 0, 1, 1], [], []>} : vector<1x32xbf16>, vector<32x32xbf16>, vector<1x32xf32> -> vector<1x32xf32>
    %40 = arith.addf %35, %39 : vector<1x32xf32>
    %41 = vector.extract_strided_slice %29 {offsets = [2, 0], sizes = [1, 32], strides = [1, 1]} : vector<8x32xbf16> to vector<1x32xbf16>
    %c2 = arith.constant 2 : index
    %c0_19 = arith.constant 0 : index
    %c0_20 = arith.constant 0 : index
    %42 = vector.load %arg5[%c2, %c0_19, %c0_20] : memref<8x32x32xbf16, #tpu.memory_space<vmem>>, vector<1x32x32xbf16>
    %43 = vector.shape_cast %42 : vector<1x32x32xbf16> to vector<32x32xbf16>
    %cst_21 = arith.constant dense<0.000000e+00> : vector<1x32xf32>
    %44 = tpu.matmul %41, %43, %cst_21 {dimension_numbers = #tpu.dot_dimension_numbers<[1], [0], [0], [1], [0, 0, 1, 1], [], []>} : vector<1x32xbf16>, vector<32x32xbf16>, vector<1x32xf32> -> vector<1x32xf32>
    %45 = arith.addf %40, %44 : vector<1x32xf32>
    %46 = vector.extract_strided_slice %29 {offsets = [3, 0], sizes = [1, 32], strides = [1, 1]} : vector<8x32xbf16> to vector<1x32xbf16>
    %c3 = arith.constant 3 : index
    %c0_22 = arith.constant 0 : index
    %c0_23 = arith.constant 0 : index
    %47 = vector.load %arg5[%c3, %c0_22, %c0_23] : memref<8x32x32xbf16, #tpu.memory_space<vmem>>, vector<1x32x32xbf16>
    %48 = vector.shape_cast %47 : vector<1x32x32xbf16> to vector<32x32xbf16>
    %cst_24 = arith.constant dense<0.000000e+00> : vector<1x32xf32>
    %49 = tpu.matmul %46, %48, %cst_24 {dimension_numbers = #tpu.dot_dimension_numbers<[1], [0], [0], [1], [0, 0, 1, 1], [], []>} : vector<1x32xbf16>, vector<32x32xbf16>, vector<1x32xf32> -> vector<1x32xf32>
    %50 = arith.addf %45, %49 : vector<1x32xf32>
    %51 = vector.extract_strided_slice %29 {offsets = [4, 0], sizes = [1, 32], strides = [1, 1]} : vector<8x32xbf16> to vector<1x32xbf16>
    %c4 = arith.constant 4 : index
    %c0_25 = arith.constant 0 : index
    %c0_26 = arith.constant 0 : index
    %52 = vector.load %arg5[%c4, %c0_25, %c0_26] : memref<8x32x32xbf16, #tpu.memory_space<vmem>>, vector<1x32x32xbf16>
    %53 = vector.shape_cast %52 : vector<1x32x32xbf16> to vector<32x32xbf16>
    %cst_27 = arith.constant dense<0.000000e+00> : vector<1x32xf32>
    %54 = tpu.matmul %51, %53, %cst_27 {dimension_numbers = #tpu.dot_dimension_numbers<[1], [0], [0], [1], [0, 0, 1, 1], [], []>} : vector<1x32xbf16>, vector<32x32xbf16>, vector<1x32xf32> -> vector<1x32xf32>
    %55 = arith.addf %50, %54 : vector<1x32xf32>
    %56 = vector.extract_strided_slice %29 {offsets = [5, 0], sizes = [1, 32], strides = [1, 1]} : vector<8x32xbf16> to vector<1x32xbf16>
    %c5 = arith.constant 5 : index
    %c0_28 = arith.constant 0 : index
    %c0_29 = arith.constant 0 : index
    %57 = vector.load %arg5[%c5, %c0_28, %c0_29] : memref<8x32x32xbf16, #tpu.memory_space<vmem>>, vector<1x32x32xbf16>
    %58 = vector.shape_cast %57 : vector<1x32x32xbf16> to vector<32x32xbf16>
    %cst_30 = arith.constant dense<0.000000e+00> : vector<1x32xf32>
    %59 = tpu.matmul %56, %58, %cst_30 {dimension_numbers = #tpu.dot_dimension_numbers<[1], [0], [0], [1], [0, 0, 1, 1], [], []>} : vector<1x32xbf16>, vector<32x32xbf16>, vector<1x32xf32> -> vector<1x32xf32>
    %60 = arith.addf %55, %59 : vector<1x32xf32>
    %61 = vector.extract_strided_slice %29 {offsets = [6, 0], sizes = [1, 32], strides = [1, 1]} : vector<8x32xbf16> to vector<1x32xbf16>
    %c6 = arith.constant 6 : index
    %c0_31 = arith.constant 0 : index
    %c0_32 = arith.constant 0 : index
    %62 = vector.load %arg5[%c6, %c0_31, %c0_32] : memref<8x32x32xbf16, #tpu.memory_space<vmem>>, vector<1x32x32xbf16>
    %63 = vector.shape_cast %62 : vector<1x32x32xbf16> to vector<32x32xbf16>
    %cst_33 = arith.constant dense<0.000000e+00> : vector<1x32xf32>
    %64 = tpu.matmul %61, %63, %cst_33 {dimension_numbers = #tpu.dot_dimension_numbers<[1], [0], [0], [1], [0, 0, 1, 1], [], []>} : vector<1x32xbf16>, vector<32x32xbf16>, vector<1x32xf32> -> vector<1x32xf32>
    %65 = arith.addf %60, %64 : vector<1x32xf32>
    %66 = vector.extract_strided_slice %29 {offsets = [7, 0], sizes = [1, 32], strides = [1, 1]} : vector<8x32xbf16> to vector<1x32xbf16>
    %c7 = arith.constant 7 : index
    %c0_34 = arith.constant 0 : index
    %c0_35 = arith.constant 0 : index
    %67 = vector.load %arg5[%c7, %c0_34, %c0_35] : memref<8x32x32xbf16, #tpu.memory_space<vmem>>, vector<1x32x32xbf16>
    %68 = vector.shape_cast %67 : vector<1x32x32xbf16> to vector<32x32xbf16>
    %cst_36 = arith.constant dense<0.000000e+00> : vector<1x32xf32>
    %69 = tpu.matmul %66, %68, %cst_36 {dimension_numbers = #tpu.dot_dimension_numbers<[1], [0], [0], [1], [0, 0, 1, 1], [], []>} : vector<1x32xbf16>, vector<32x32xbf16>, vector<1x32xf32> -> vector<1x32xf32>
    %70 = arith.addf %65, %69 : vector<1x32xf32>
    %c0_37 = arith.constant 0 : index
    %c0_38 = arith.constant 0 : index
    %71 = vector.load %arg10[%c0_37, %c0_38] : memref<1x32xf32, #tpu.memory_space<vmem>>, vector<1x32xf32>
    %72 = arith.addf %71, %70 : vector<1x32xf32>
    %c0_39 = arith.constant 0 : index
    %c0_40 = arith.constant 0 : index
    %73 = vector.load %arg10[%c0_39, %c0_40] : memref<1x32xf32, #tpu.memory_space<vmem>>, vector<1x32xf32>
    tpu.vector_store %arg10[%c0_39, %c0_40], %72 {strides = array<i32>} : memref<1x32xf32, #tpu.memory_space<vmem>>, vector<1x32xf32>,
    %c0_i32_41 = arith.constant 0 : i32
    %74 = arith.cmpi eq, %arg1, %c0_i32_41 : i32
    %75 = arith.extui %74 : i1 to i32
    %c0_i32_42 = arith.constant 0 : i32
    %76 = arith.cmpi ne, %75, %c0_i32_42 : i32
    scf.if %76 {
      %c0_43 = arith.constant 0 : index
      %c0_44 = arith.constant 0 : index
      %77 = vector.load %arg10[%c0_43, %c0_44] : memref<1x32xf32, #tpu.memory_space<vmem>>, vector<1x32xf32>
      %c0_45 = arith.constant 0 : index
      %c0_46 = arith.constant 0 : index
      %78 = vector.load %arg6[%c0_45, %c0_46] : memref<1x32xf32, #tpu.memory_space<vmem>>, vector<1x32xf32>
      %79 = arith.addf %77, %78 : vector<1x32xf32>
      %cst_47 = arith.constant 0.000000e+00 : f32
      %80 = vector.broadcast %cst_47 : f32 to vector<1x32xf32>
      %81 = arith.maximumf %79, %80 : vector<1x32xf32>
      %82 = arith.truncf %81 : vector<1x32xf32> to vector<1x32xbf16>
      %c0_48 = arith.constant 0 : index
      %c0_49 = arith.constant 0 : index
      %83 = vector.load %arg7[%c0_48, %c0_49] : memref<32x3xbf16, #tpu.memory_space<vmem>>, vector<32x3xbf16>
      %cst_50 = arith.constant dense<0.000000e+00> : vector<1x3xf32>
      %84 = tpu.matmul %82, %83, %cst_50 {dimension_numbers = #tpu.dot_dimension_numbers<[1], [0], [0], [1], [0, 0, 1, 1], [], []>} : vector<1x32xbf16>, vector<32x3xbf16>, vector<1x3xf32> -> vector<1x3xf32>
      %c0_51 = arith.constant 0 : index
      %c0_52 = arith.constant 0 : index
      %85 = vector.load %arg8[%c0_51, %c0_52] : memref<1x3xf32, #tpu.memory_space<vmem>>, vector<1x3xf32>
      %86 = arith.addf %84, %85 : vector<1x3xf32>
      %c0_53 = arith.constant 0 : index
      %c0_54 = arith.constant 0 : index
      %c0_55 = arith.constant 0 : index
      %87 = vector.load %arg9[%c0_53, %c0_54, %c0_55] : memref<1x1x3xf32, #tpu.memory_space<vmem>>, vector<1x1x3xf32>
      %88 = vector.shape_cast %87 : vector<1x1x3xf32> to vector<1x3xf32>
      %89 = vector.shape_cast %86 : vector<1x3xf32> to vector<1x1x3xf32>
      tpu.vector_store %arg9[%c0_53, %c0_54, %c0_55], %89 {strides = array<i32>} : memref<1x1x3xf32, #tpu.memory_space<vmem>>, vector<1x1x3xf32>,
    } else {
    }
    return
  }
  func.func @transform_0(%arg0: i32, %arg1: i32) -> (i32, i32, i32) {
    %c0_i32 = arith.constant 0 : i32
    %c0_i32_0 = arith.constant 0 : i32
    return %arg0, %arg1, %c0_i32 : i32, i32, i32
  }
  func.func @transform_1(%arg0: i32, %arg1: i32) -> (i32, i32) {
    %c0_i32 = arith.constant 0 : i32
    %c0_i32_0 = arith.constant 0 : i32
    %c0_i32_1 = arith.constant 0 : i32
    return %c0_i32, %c0_i32_0 : i32, i32
  }
  func.func @transform_2(%arg0: i32, %arg1: i32) -> (i32, i32) {
    %c0_i32 = arith.constant 0 : i32
    %c0_i32_0 = arith.constant 0 : i32
    %c0_i32_1 = arith.constant 0 : i32
    return %c0_i32, %c0_i32_0 : i32, i32
  }
  func.func @transform_3(%arg0: i32, %arg1: i32) -> (i32, i32, i32) {
    %c0_i32 = arith.constant 0 : i32
    %c0_i32_0 = arith.constant 0 : i32
    %c0_i32_1 = arith.constant 0 : i32
    return %arg1, %c0_i32, %c0_i32_0 : i32, i32, i32
  }
  func.func @transform_4(%arg0: i32, %arg1: i32) -> (i32, i32) {
    %c0_i32 = arith.constant 0 : i32
    %c0_i32_0 = arith.constant 0 : i32
    %c0_i32_1 = arith.constant 0 : i32
    return %c0_i32, %c0_i32_0 : i32, i32
  }
  func.func @transform_5(%arg0: i32, %arg1: i32) -> (i32, i32) {
    %c0_i32 = arith.constant 0 : i32
    %c0_i32_0 = arith.constant 0 : i32
    %c0_i32_1 = arith.constant 0 : i32
    return %c0_i32, %c0_i32_0 : i32, i32
  }
  func.func @transform_6(%arg0: i32, %arg1: i32) -> (i32, i32) {
    %c0_i32 = arith.constant 0 : i32
    %c0_i32_0 = arith.constant 0 : i32
    %c0_i32_1 = arith.constant 0 : i32
    return %c0_i32, %c0_i32_0 : i32, i32
  }
  func.func @transform_7(%arg0: i32, %arg1: i32) -> (i32, i32, i32) {
    %c0_i32 = arith.constant 0 : i32
    %c0_i32_0 = arith.constant 0 : i32
    %c0_i32_1 = arith.constant 0 : i32
    return %arg0, %c0_i32, %c0_i32_0 : i32, i32, i32
  }
}

module attributes {stable_mosaic.version = 11 : i64} {
  func.func @_attn_block_kernel(%arg0: i32, %arg1: memref<1x8x32xf32, #tpu.memory_space<vmem>>, %arg2: memref<1x1x8xf32, #tpu.memory_space<vmem>>, %arg3: memref<1x32xf32, #tpu.memory_space<vmem>>, %arg4: memref<1x32xf32, #tpu.memory_space<vmem>>, %arg5: memref<32x96xbf16, #tpu.memory_space<vmem>>, %arg6: memref<1x96xf32, #tpu.memory_space<vmem>>, %arg7: memref<4x8x32xbf16, #tpu.memory_space<vmem>>, %arg8: memref<1x32xf32, #tpu.memory_space<vmem>>, %arg9: memref<1x8x32xf32, #tpu.memory_space<vmem>>) attributes {dimension_semantics = [#tpu.dimension_semantics<parallel>], iteration_bounds = array<i64: 2>, scalar_prefetch = 0 : i64, scratch_operands = 0 : i64, tpu.core_type = #tpu.core_type<tc>, window_params = [{transform_indices = @transform_0, window_bounds = array<i64: 1, 8, 32>}, {transform_indices = @transform_1, window_bounds = array<i64: 1, 1, 8>}, {pipeline_mode = #tpu.pipeline_mode<synchronous>, transform_indices = @transform_2, window_bounds = array<i64: 1, 32>}, {pipeline_mode = #tpu.pipeline_mode<synchronous>, transform_indices = @transform_3, window_bounds = array<i64: 1, 32>}, {pipeline_mode = #tpu.pipeline_mode<synchronous>, transform_indices = @transform_4, window_bounds = array<i64: 32, 96>}, {pipeline_mode = #tpu.pipeline_mode<synchronous>, transform_indices = @transform_5, window_bounds = array<i64: 1, 96>}, {pipeline_mode = #tpu.pipeline_mode<synchronous>, transform_indices = @transform_6, window_bounds = array<i64: 4, 8, 32>}, {pipeline_mode = #tpu.pipeline_mode<synchronous>, transform_indices = @transform_7, window_bounds = array<i64: 1, 32>}, {transform_indices = @transform_8, window_bounds = array<i64: 1, 8, 32>}]} {
    %c0 = arith.constant 0 : index
    %c0_0 = arith.constant 0 : index
    %c0_1 = arith.constant 0 : index
    %0 = vector.load %arg1[%c0, %c0_0, %c0_1] : memref<1x8x32xf32, #tpu.memory_space<vmem>>, vector<1x8x32xf32>
    %1 = vector.shape_cast %0 : vector<1x8x32xf32> to vector<8x32xf32>
    %cst = arith.constant dense<0.000000e+00> : vector<8xf32>
    %2 = vector.multi_reduction <add>, %1, %cst [1] : vector<8x32xf32> to vector<8xf32>
    %3 = vector.shape_cast %2 : vector<8xf32> to vector<8x1xf32>
    %cst_2 = arith.constant 3.200000e+01 : f32
    %4 = vector.broadcast %cst_2 : f32 to vector<8x1xf32>
    %5 = arith.divf %3, %4 : vector<8x1xf32>
    %6 = vector.broadcast %5 : vector<8x1xf32> to vector<8x32xf32>
    %7 = arith.subf %1, %6 : vector<8x32xf32>
    %8 = arith.mulf %7, %7 : vector<8x32xf32>
    %cst_3 = arith.constant dense<0.000000e+00> : vector<8xf32>
    %9 = vector.multi_reduction <add>, %8, %cst_3 [1] : vector<8x32xf32> to vector<8xf32>
    %10 = vector.shape_cast %9 : vector<8xf32> to vector<8x1xf32>
    %cst_4 = arith.constant 3.200000e+01 : f32
    %11 = vector.broadcast %cst_4 : f32 to vector<8x1xf32>
    %12 = arith.divf %10, %11 : vector<8x1xf32>
    %13 = vector.broadcast %5 : vector<8x1xf32> to vector<8x32xf32>
    %14 = arith.subf %1, %13 : vector<8x32xf32>
    %cst_5 = arith.constant 9.99999974E-6 : f32
    %15 = vector.broadcast %cst_5 : f32 to vector<8x1xf32>
    %16 = arith.addf %12, %15 : vector<8x1xf32>
    %17 = math.rsqrt %16 : vector<8x1xf32>
    %18 = vector.broadcast %17 : vector<8x1xf32> to vector<8x32xf32>
    %19 = arith.mulf %14, %18 : vector<8x32xf32>
    %c0_6 = arith.constant 0 : index
    %c0_7 = arith.constant 0 : index
    %20 = vector.load %arg3[%c0_6, %c0_7] : memref<1x32xf32, #tpu.memory_space<vmem>>, vector<1x32xf32>
    %21 = vector.broadcast %20 : vector<1x32xf32> to vector<8x32xf32>
    %22 = arith.mulf %19, %21 : vector<8x32xf32>
    %c0_8 = arith.constant 0 : index
    %c0_9 = arith.constant 0 : index
    %23 = vector.load %arg4[%c0_8, %c0_9] : memref<1x32xf32, #tpu.memory_space<vmem>>, vector<1x32xf32>
    %24 = vector.broadcast %23 : vector<1x32xf32> to vector<8x32xf32>
    %25 = arith.addf %22, %24 : vector<8x32xf32>
    %26 = arith.truncf %25 : vector<8x32xf32> to vector<8x32xbf16>
    %c0_10 = arith.constant 0 : index
    %c0_11 = arith.constant 0 : index
    %27 = vector.load %arg5[%c0_10, %c0_11] : memref<32x96xbf16, #tpu.memory_space<vmem>>, vector<32x96xbf16>
    %cst_12 = arith.constant dense<0.000000e+00> : vector<8x96xf32>
    %28 = tpu.matmul %26, %27, %cst_12 {dimension_numbers = #tpu.dot_dimension_numbers<[1], [0], [0], [1], [0, 0, 1, 1], [], []>} : vector<8x32xbf16>, vector<32x96xbf16>, vector<8x96xf32> -> vector<8x96xf32>
    %c0_13 = arith.constant 0 : index
    %c0_14 = arith.constant 0 : index
    %29 = vector.load %arg6[%c0_13, %c0_14] : memref<1x96xf32, #tpu.memory_space<vmem>>, vector<1x96xf32>
    %30 = vector.broadcast %29 : vector<1x96xf32> to vector<8x96xf32>
    %31 = arith.addf %28, %30 : vector<8x96xf32>
    %c0_15 = arith.constant 0 : index
    %c0_16 = arith.constant 0 : index
    %c0_17 = arith.constant 0 : index
    %32 = vector.load %arg2[%c0_15, %c0_16, %c0_17] : memref<1x1x8xf32, #tpu.memory_space<vmem>>, vector<1x1x8xf32>
    %33 = vector.shape_cast %32 : vector<1x1x8xf32> to vector<1x8xf32>
    %cst_18 = arith.constant 0.000000e+00 : f32
    %34 = vector.broadcast %cst_18 : f32 to vector<8x32xf32>
    %35 = vector.extract_strided_slice %31 {offsets = [0, 0], sizes = [8, 8], strides = [1, 1]} : vector<8x96xf32> to vector<8x8xf32>
    %36 = vector.extract_strided_slice %31 {offsets = [0, 32], sizes = [8, 8], strides = [1, 1]} : vector<8x96xf32> to vector<8x8xf32>
    %37 = vector.extract_strided_slice %31 {offsets = [0, 64], sizes = [8, 8], strides = [1, 1]} : vector<8x96xf32> to vector<8x8xf32>
    %38 = arith.truncf %35 : vector<8x8xf32> to vector<8x8xbf16>
    %39 = arith.truncf %36 : vector<8x8xf32> to vector<8x8xbf16>
    %cst_19 = arith.constant dense<0.000000e+00> : vector<8x8xf32>
    %40 = tpu.matmul %38, %39, %cst_19 {dimension_numbers = #tpu.dot_dimension_numbers<[1], [1], [0], [0], [0, 0, 1, 0], [], []>} : vector<8x8xbf16>, vector<8x8xbf16>, vector<8x8xf32> -> vector<8x8xf32>
    %cst_20 = arith.constant 0.353553385 : f32
    %41 = vector.broadcast %cst_20 : f32 to vector<8x8xf32>
    %42 = arith.mulf %40, %41 : vector<8x8xf32>
    %43 = vector.broadcast %33 : vector<1x8xf32> to vector<8x8xf32>
    %44 = arith.addf %42, %43 : vector<8x8xf32>
    %cst_21 = arith.constant dense<0xFF800000> : vector<8xf32>
    %45 = vector.multi_reduction <maximumf>, %44, %cst_21 [1] : vector<8x8xf32> to vector<8xf32>
    %46 = vector.shape_cast %45 : vector<8xf32> to vector<8x1xf32>
    %47 = vector.broadcast %46 : vector<8x1xf32> to vector<8x8xf32>
    %48 = arith.subf %44, %47 : vector<8x8xf32>
    %49 = math.exp %48 : vector<8x8xf32>
    %cst_22 = arith.constant dense<0.000000e+00> : vector<8xf32>
    %50 = vector.multi_reduction <add>, %49, %cst_22 [1] : vector<8x8xf32> to vector<8xf32>
    %51 = vector.shape_cast %50 : vector<8xf32> to vector<8x1xf32>
    %52 = tpu.reciprocal %51 {approx = true} : vector<8x1xf32> -> vector<8x1xf32>
    %53 = vector.broadcast %52 : vector<8x1xf32> to vector<8x8xf32>
    %54 = arith.mulf %49, %53 : vector<8x8xf32>
    %55 = arith.truncf %54 : vector<8x8xf32> to vector<8x8xbf16>
    %56 = arith.truncf %37 : vector<8x8xf32> to vector<8x8xbf16>
    %cst_23 = arith.constant dense<0.000000e+00> : vector<8x8xf32>
    %57 = tpu.matmul %55, %56, %cst_23 {dimension_numbers = #tpu.dot_dimension_numbers<[1], [0], [0], [1], [0, 0, 1, 1], [], []>} : vector<8x8xbf16>, vector<8x8xbf16>, vector<8x8xf32> -> vector<8x8xf32>
    %58 = arith.truncf %57 : vector<8x8xf32> to vector<8x8xbf16>
    %c0_24 = arith.constant 0 : index
    %c0_25 = arith.constant 0 : index
    %c0_26 = arith.constant 0 : index
    %59 = vector.load %arg7[%c0_24, %c0_25, %c0_26] : memref<4x8x32xbf16, #tpu.memory_space<vmem>>, vector<1x8x32xbf16>
    %60 = vector.shape_cast %59 : vector<1x8x32xbf16> to vector<8x32xbf16>
    %cst_27 = arith.constant dense<0.000000e+00> : vector<8x32xf32>
    %61 = tpu.matmul %58, %60, %cst_27 {dimension_numbers = #tpu.dot_dimension_numbers<[1], [0], [0], [1], [0, 0, 1, 1], [], []>} : vector<8x8xbf16>, vector<8x32xbf16>, vector<8x32xf32> -> vector<8x32xf32>
    %62 = arith.addf %34, %61 : vector<8x32xf32>
    %63 = vector.extract_strided_slice %31 {offsets = [0, 8], sizes = [8, 8], strides = [1, 1]} : vector<8x96xf32> to vector<8x8xf32>
    %64 = vector.extract_strided_slice %31 {offsets = [0, 40], sizes = [8, 8], strides = [1, 1]} : vector<8x96xf32> to vector<8x8xf32>
    %65 = vector.extract_strided_slice %31 {offsets = [0, 72], sizes = [8, 8], strides = [1, 1]} : vector<8x96xf32> to vector<8x8xf32>
    %66 = arith.truncf %63 : vector<8x8xf32> to vector<8x8xbf16>
    %67 = arith.truncf %64 : vector<8x8xf32> to vector<8x8xbf16>
    %cst_28 = arith.constant dense<0.000000e+00> : vector<8x8xf32>
    %68 = tpu.matmul %66, %67, %cst_28 {dimension_numbers = #tpu.dot_dimension_numbers<[1], [1], [0], [0], [0, 0, 1, 0], [], []>} : vector<8x8xbf16>, vector<8x8xbf16>, vector<8x8xf32> -> vector<8x8xf32>
    %cst_29 = arith.constant 0.353553385 : f32
    %69 = vector.broadcast %cst_29 : f32 to vector<8x8xf32>
    %70 = arith.mulf %68, %69 : vector<8x8xf32>
    %71 = vector.broadcast %33 : vector<1x8xf32> to vector<8x8xf32>
    %72 = arith.addf %70, %71 : vector<8x8xf32>
    %cst_30 = arith.constant dense<0xFF800000> : vector<8xf32>
    %73 = vector.multi_reduction <maximumf>, %72, %cst_30 [1] : vector<8x8xf32> to vector<8xf32>
    %74 = vector.shape_cast %73 : vector<8xf32> to vector<8x1xf32>
    %75 = vector.broadcast %74 : vector<8x1xf32> to vector<8x8xf32>
    %76 = arith.subf %72, %75 : vector<8x8xf32>
    %77 = math.exp %76 : vector<8x8xf32>
    %cst_31 = arith.constant dense<0.000000e+00> : vector<8xf32>
    %78 = vector.multi_reduction <add>, %77, %cst_31 [1] : vector<8x8xf32> to vector<8xf32>
    %79 = vector.shape_cast %78 : vector<8xf32> to vector<8x1xf32>
    %80 = tpu.reciprocal %79 {approx = true} : vector<8x1xf32> -> vector<8x1xf32>
    %81 = vector.broadcast %80 : vector<8x1xf32> to vector<8x8xf32>
    %82 = arith.mulf %77, %81 : vector<8x8xf32>
    %83 = arith.truncf %82 : vector<8x8xf32> to vector<8x8xbf16>
    %84 = arith.truncf %65 : vector<8x8xf32> to vector<8x8xbf16>
    %cst_32 = arith.constant dense<0.000000e+00> : vector<8x8xf32>
    %85 = tpu.matmul %83, %84, %cst_32 {dimension_numbers = #tpu.dot_dimension_numbers<[1], [0], [0], [1], [0, 0, 1, 1], [], []>} : vector<8x8xbf16>, vector<8x8xbf16>, vector<8x8xf32> -> vector<8x8xf32>
    %86 = arith.truncf %85 : vector<8x8xf32> to vector<8x8xbf16>
    %c1 = arith.constant 1 : index
    %c0_33 = arith.constant 0 : index
    %c0_34 = arith.constant 0 : index
    %87 = vector.load %arg7[%c1, %c0_33, %c0_34] : memref<4x8x32xbf16, #tpu.memory_space<vmem>>, vector<1x8x32xbf16>
    %88 = vector.shape_cast %87 : vector<1x8x32xbf16> to vector<8x32xbf16>
    %cst_35 = arith.constant dense<0.000000e+00> : vector<8x32xf32>
    %89 = tpu.matmul %86, %88, %cst_35 {dimension_numbers = #tpu.dot_dimension_numbers<[1], [0], [0], [1], [0, 0, 1, 1], [], []>} : vector<8x8xbf16>, vector<8x32xbf16>, vector<8x32xf32> -> vector<8x32xf32>
    %90 = arith.addf %62, %89 : vector<8x32xf32>
    %91 = vector.extract_strided_slice %31 {offsets = [0, 16], sizes = [8, 8], strides = [1, 1]} : vector<8x96xf32> to vector<8x8xf32>
    %92 = vector.extract_strided_slice %31 {offsets = [0, 48], sizes = [8, 8], strides = [1, 1]} : vector<8x96xf32> to vector<8x8xf32>
    %93 = vector.extract_strided_slice %31 {offsets = [0, 80], sizes = [8, 8], strides = [1, 1]} : vector<8x96xf32> to vector<8x8xf32>
    %94 = arith.truncf %91 : vector<8x8xf32> to vector<8x8xbf16>
    %95 = arith.truncf %92 : vector<8x8xf32> to vector<8x8xbf16>
    %cst_36 = arith.constant dense<0.000000e+00> : vector<8x8xf32>
    %96 = tpu.matmul %94, %95, %cst_36 {dimension_numbers = #tpu.dot_dimension_numbers<[1], [1], [0], [0], [0, 0, 1, 0], [], []>} : vector<8x8xbf16>, vector<8x8xbf16>, vector<8x8xf32> -> vector<8x8xf32>
    %cst_37 = arith.constant 0.353553385 : f32
    %97 = vector.broadcast %cst_37 : f32 to vector<8x8xf32>
    %98 = arith.mulf %96, %97 : vector<8x8xf32>
    %99 = vector.broadcast %33 : vector<1x8xf32> to vector<8x8xf32>
    %100 = arith.addf %98, %99 : vector<8x8xf32>
    %cst_38 = arith.constant dense<0xFF800000> : vector<8xf32>
    %101 = vector.multi_reduction <maximumf>, %100, %cst_38 [1] : vector<8x8xf32> to vector<8xf32>
    %102 = vector.shape_cast %101 : vector<8xf32> to vector<8x1xf32>
    %103 = vector.broadcast %102 : vector<8x1xf32> to vector<8x8xf32>
    %104 = arith.subf %100, %103 : vector<8x8xf32>
    %105 = math.exp %104 : vector<8x8xf32>
    %cst_39 = arith.constant dense<0.000000e+00> : vector<8xf32>
    %106 = vector.multi_reduction <add>, %105, %cst_39 [1] : vector<8x8xf32> to vector<8xf32>
    %107 = vector.shape_cast %106 : vector<8xf32> to vector<8x1xf32>
    %108 = tpu.reciprocal %107 {approx = true} : vector<8x1xf32> -> vector<8x1xf32>
    %109 = vector.broadcast %108 : vector<8x1xf32> to vector<8x8xf32>
    %110 = arith.mulf %105, %109 : vector<8x8xf32>
    %111 = arith.truncf %110 : vector<8x8xf32> to vector<8x8xbf16>
    %112 = arith.truncf %93 : vector<8x8xf32> to vector<8x8xbf16>
    %cst_40 = arith.constant dense<0.000000e+00> : vector<8x8xf32>
    %113 = tpu.matmul %111, %112, %cst_40 {dimension_numbers = #tpu.dot_dimension_numbers<[1], [0], [0], [1], [0, 0, 1, 1], [], []>} : vector<8x8xbf16>, vector<8x8xbf16>, vector<8x8xf32> -> vector<8x8xf32>
    %114 = arith.truncf %113 : vector<8x8xf32> to vector<8x8xbf16>
    %c2 = arith.constant 2 : index
    %c0_41 = arith.constant 0 : index
    %c0_42 = arith.constant 0 : index
    %115 = vector.load %arg7[%c2, %c0_41, %c0_42] : memref<4x8x32xbf16, #tpu.memory_space<vmem>>, vector<1x8x32xbf16>
    %116 = vector.shape_cast %115 : vector<1x8x32xbf16> to vector<8x32xbf16>
    %cst_43 = arith.constant dense<0.000000e+00> : vector<8x32xf32>
    %117 = tpu.matmul %114, %116, %cst_43 {dimension_numbers = #tpu.dot_dimension_numbers<[1], [0], [0], [1], [0, 0, 1, 1], [], []>} : vector<8x8xbf16>, vector<8x32xbf16>, vector<8x32xf32> -> vector<8x32xf32>
    %118 = arith.addf %90, %117 : vector<8x32xf32>
    %119 = vector.extract_strided_slice %31 {offsets = [0, 24], sizes = [8, 8], strides = [1, 1]} : vector<8x96xf32> to vector<8x8xf32>
    %120 = vector.extract_strided_slice %31 {offsets = [0, 56], sizes = [8, 8], strides = [1, 1]} : vector<8x96xf32> to vector<8x8xf32>
    %121 = vector.extract_strided_slice %31 {offsets = [0, 88], sizes = [8, 8], strides = [1, 1]} : vector<8x96xf32> to vector<8x8xf32>
    %122 = arith.truncf %119 : vector<8x8xf32> to vector<8x8xbf16>
    %123 = arith.truncf %120 : vector<8x8xf32> to vector<8x8xbf16>
    %cst_44 = arith.constant dense<0.000000e+00> : vector<8x8xf32>
    %124 = tpu.matmul %122, %123, %cst_44 {dimension_numbers = #tpu.dot_dimension_numbers<[1], [1], [0], [0], [0, 0, 1, 0], [], []>} : vector<8x8xbf16>, vector<8x8xbf16>, vector<8x8xf32> -> vector<8x8xf32>
    %cst_45 = arith.constant 0.353553385 : f32
    %125 = vector.broadcast %cst_45 : f32 to vector<8x8xf32>
    %126 = arith.mulf %124, %125 : vector<8x8xf32>
    %127 = vector.broadcast %33 : vector<1x8xf32> to vector<8x8xf32>
    %128 = arith.addf %126, %127 : vector<8x8xf32>
    %cst_46 = arith.constant dense<0xFF800000> : vector<8xf32>
    %129 = vector.multi_reduction <maximumf>, %128, %cst_46 [1] : vector<8x8xf32> to vector<8xf32>
    %130 = vector.shape_cast %129 : vector<8xf32> to vector<8x1xf32>
    %131 = vector.broadcast %130 : vector<8x1xf32> to vector<8x8xf32>
    %132 = arith.subf %128, %131 : vector<8x8xf32>
    %133 = math.exp %132 : vector<8x8xf32>
    %cst_47 = arith.constant dense<0.000000e+00> : vector<8xf32>
    %134 = vector.multi_reduction <add>, %133, %cst_47 [1] : vector<8x8xf32> to vector<8xf32>
    %135 = vector.shape_cast %134 : vector<8xf32> to vector<8x1xf32>
    %136 = tpu.reciprocal %135 {approx = true} : vector<8x1xf32> -> vector<8x1xf32>
    %137 = vector.broadcast %136 : vector<8x1xf32> to vector<8x8xf32>
    %138 = arith.mulf %133, %137 : vector<8x8xf32>
    %139 = arith.truncf %138 : vector<8x8xf32> to vector<8x8xbf16>
    %140 = arith.truncf %121 : vector<8x8xf32> to vector<8x8xbf16>
    %cst_48 = arith.constant dense<0.000000e+00> : vector<8x8xf32>
    %141 = tpu.matmul %139, %140, %cst_48 {dimension_numbers = #tpu.dot_dimension_numbers<[1], [0], [0], [1], [0, 0, 1, 1], [], []>} : vector<8x8xbf16>, vector<8x8xbf16>, vector<8x8xf32> -> vector<8x8xf32>
    %142 = arith.truncf %141 : vector<8x8xf32> to vector<8x8xbf16>
    %c3 = arith.constant 3 : index
    %c0_49 = arith.constant 0 : index
    %c0_50 = arith.constant 0 : index
    %143 = vector.load %arg7[%c3, %c0_49, %c0_50] : memref<4x8x32xbf16, #tpu.memory_space<vmem>>, vector<1x8x32xbf16>
    %144 = vector.shape_cast %143 : vector<1x8x32xbf16> to vector<8x32xbf16>
    %cst_51 = arith.constant dense<0.000000e+00> : vector<8x32xf32>
    %145 = tpu.matmul %142, %144, %cst_51 {dimension_numbers = #tpu.dot_dimension_numbers<[1], [0], [0], [1], [0, 0, 1, 1], [], []>} : vector<8x8xbf16>, vector<8x32xbf16>, vector<8x32xf32> -> vector<8x32xf32>
    %146 = arith.addf %118, %145 : vector<8x32xf32>
    %147 = arith.addf %1, %146 : vector<8x32xf32>
    %c0_52 = arith.constant 0 : index
    %c0_53 = arith.constant 0 : index
    %148 = vector.load %arg8[%c0_52, %c0_53] : memref<1x32xf32, #tpu.memory_space<vmem>>, vector<1x32xf32>
    %149 = vector.broadcast %148 : vector<1x32xf32> to vector<8x32xf32>
    %150 = arith.addf %147, %149 : vector<8x32xf32>
    %c0_54 = arith.constant 0 : index
    %c0_55 = arith.constant 0 : index
    %c0_56 = arith.constant 0 : index
    %151 = vector.load %arg9[%c0_54, %c0_55, %c0_56] : memref<1x8x32xf32, #tpu.memory_space<vmem>>, vector<1x8x32xf32>
    %152 = vector.shape_cast %151 : vector<1x8x32xf32> to vector<8x32xf32>
    %153 = vector.shape_cast %150 : vector<8x32xf32> to vector<1x8x32xf32>
    tpu.vector_store %arg9[%c0_54, %c0_55, %c0_56], %153 {strides = array<i32>} : memref<1x8x32xf32, #tpu.memory_space<vmem>>, vector<1x8x32xf32>,
    return
  }
  func.func @transform_0(%arg0: i32) -> (i32, i32, i32) {
    %c0_i32 = arith.constant 0 : i32
    %c0_i32_0 = arith.constant 0 : i32
    %c0_i32_1 = arith.constant 0 : i32
    return %arg0, %c0_i32, %c0_i32_0 : i32, i32, i32
  }
  func.func @transform_1(%arg0: i32) -> (i32, i32, i32) {
    %c0_i32 = arith.constant 0 : i32
    %c0_i32_0 = arith.constant 0 : i32
    %c0_i32_1 = arith.constant 0 : i32
    return %arg0, %c0_i32, %c0_i32_0 : i32, i32, i32
  }
  func.func @transform_2(%arg0: i32) -> (i32, i32) {
    %c0_i32 = arith.constant 0 : i32
    %c0_i32_0 = arith.constant 0 : i32
    %c0_i32_1 = arith.constant 0 : i32
    return %c0_i32, %c0_i32_0 : i32, i32
  }
  func.func @transform_3(%arg0: i32) -> (i32, i32) {
    %c0_i32 = arith.constant 0 : i32
    %c0_i32_0 = arith.constant 0 : i32
    %c0_i32_1 = arith.constant 0 : i32
    return %c0_i32, %c0_i32_0 : i32, i32
  }
  func.func @transform_4(%arg0: i32) -> (i32, i32) {
    %c0_i32 = arith.constant 0 : i32
    %c0_i32_0 = arith.constant 0 : i32
    %c0_i32_1 = arith.constant 0 : i32
    return %c0_i32, %c0_i32_0 : i32, i32
  }
  func.func @transform_5(%arg0: i32) -> (i32, i32) {
    %c0_i32 = arith.constant 0 : i32
    %c0_i32_0 = arith.constant 0 : i32
    %c0_i32_1 = arith.constant 0 : i32
    return %c0_i32, %c0_i32_0 : i32, i32
  }
  func.func @transform_6(%arg0: i32) -> (i32, i32, i32) {
    %c0_i32 = arith.constant 0 : i32
    %c0_i32_0 = arith.constant 0 : i32
    %c0_i32_1 = arith.constant 0 : i32
    %c0_i32_2 = arith.constant 0 : i32
    return %c0_i32, %c0_i32_0, %c0_i32_1 : i32, i32, i32
  }
  func.func @transform_7(%arg0: i32) -> (i32, i32) {
    %c0_i32 = arith.constant 0 : i32
    %c0_i32_0 = arith.constant 0 : i32
    %c0_i32_1 = arith.constant 0 : i32
    return %c0_i32, %c0_i32_0 : i32, i32
  }
  func.func @transform_8(%arg0: i32) -> (i32, i32, i32) {
    %c0_i32 = arith.constant 0 : i32
    %c0_i32_0 = arith.constant 0 : i32
    %c0_i32_1 = arith.constant 0 : i32
    return %arg0, %c0_i32, %c0_i32_0 : i32, i32, i32
  }
}

</mosaic_0001>

<bundles_post_ra>
// kernel: tb_forward.6
= control target key start
LH: loop header
LB: loop body
LE: loop exit
PB: predicated region body
PF: predicated region fallthrough
CT: control target
= control target key end

     0   :  { %s678_s24 = smov 0   ;;  %s753_s0 = inlined_call_operand.vmem [shape: f32[2,8,32], index: 0, kind: input, shape index: {}]   ;;  %s754_s1 = inlined_call_operand.vmem [shape: f32[1,32], index: 1, kind: input, shape index: {}]   ;;  %s755_s2 = inlined_call_operand.vmem [shape: f32[1,32], index: 2, kind: input, shape index: {}]   ;;  %s756_s3 = inlined_call_operand.vmem [shape: bf16[32,128], index: 3, kind: input, shape index: {}]   ;;  %s757_s4 = inlined_call_operand.vmem [shape: f32[1,128], index: 4, kind: input, shape index: {}]   ;;  %s758_s5 = inlined_call_operand.vmem [shape: bf16[128,32], index: 5, kind: input, shape index: {}]   ;;  %s759_s6 = inlined_call_operand.vmem [shape: f32[1,32], index: 6, kind: input, shape index: {}]   ;;  %s760_s7 = inlined_call_operand.vmem [shape: f32[2,8,32], index: 7, kind: output, shape index: {}]  }
   0x1 LB: > { %s542_s25 = sadd.s32 4294967295, %s634_s24   ;;  %p546_p0 = scmp.ge.s32.totalorder %s634_s24, 1  ;;  %s634_s24 = sphi %s678_s24, %s17_s24  }
   0x2   : > { %p236_p1 = scmp.lt.s32.totalorder %s634_s24, 3 }
   0x4   : > { %p237_p2 = pnand %p546_p0, %p236_p1 }
   0x5   : > { %p266_p3 = scmp.lt.s32.totalorder (!%p237_p2), %s542_s25, 1 }
   0x6   : > { %240 = sbr.rel (%p237_p2) target bundleno = 723 (0x2d3), region = 48 }
   0xb   : > { %s762_s25 = smov (!%p266_p3, %s542_s25), 1  ;;  %vm276_vm0 = vcmask 261120   ;;  %v616_v7 = vld [vmem:[%s756_s3 + $0x8] sm:$0xff]   ;;  %v636_v8 = vmov 0.0   ;;  %vm637_vm1 = vmmov 0   ;;  %v617_v9 = vld [vmem:[%s756_s3] sm:$0xff]  }
   0xc   : > { %s547_s26 = sshll.u32 %s762_s25, 3  ;;  %578 = vmatprep.subr.bf16.mxu0 %v636_v8  ;;  %582 = vmatprep.mubr.msk.bf16.mxu0 %vm637_vm1, %v636_v8  ;;  %v618_v10 = vld [vmem:[%s758_s5 + $0x38] sm:$0xff]   ;;  %v619_v11 = vld [vmem:[%s758_s5 + $0x30] sm:$0xff]   ;;  %v620_v12 = vld [vmem:[%s758_s5 + $0x28] sm:$0xff]  }
   0xd   : > { %s269_s29 = scalar_lea.vmem %s753_s0, %s547_s26  ;;  %579 = vmatpush3.bf16.msra.mxu0 %v616_v7  ;;  %586 = vmatprep.subr.bf16.mxu1 %v636_v8  ;;  %v621_v13 = vld [vmem:[%s758_s5 + $0x20] sm:$0xff]   ;;  %v622_v14 = vld [vmem:[%s758_s5 + $0x18] sm:$0xff]   ;;  %v623_v15 = vld [vmem:[%s758_s5 + $0x10] sm:$0xff]   ;;  %s273_s17 = scalar_lea.vmem %s760_s7, %s547_s26 }
   0xe   : > { %v694_v0 = vld [vmem:[%s269_s29] sm:$0xff]  ;;  %580 = vmatprep.subr.bf16.mxu0 %v636_v8  ;;  %602 = vmatprep.mubr.msk.bf16.mxu1 %vm637_vm1, %v636_v8  ;;  %v624_v26 = vld [vmem:[%s758_s5 + $0x8] sm:$0xff]  }
   0xf   : > { %v277_v1 = vsel %vm276_vm0, %v694_v0, 0.0  ;;  %587 = vmatpush3.bf16.msra.mxu1 %v618_v10  ;;  %v549_v20 = vld [vmem:[%s754_s1] ss:$0 sm:$0xff] }
  0x10   : > { %278 = vadd.xlane.f32.xlu0 %v277_v1  ;;  %588 = vmatprep.subr.bf16.mxu1 %v636_v8  ;;  %v550_v22 = vld [vmem:[%s755_s2] ss:$0 sm:$0xff] }
  0x11   : > { %581 = vmatpush3.bf16.msra.mxu0 %v617_v9  ;;  %v625_v27 = vld [vmem:[%s758_s5] sm:$0xff]  }
  0x12   : > { %v551_v28 = vld [vmem:[%s757_s4] ss:$0 sm:$0xff] }
  0x13   : > { %589 = vmatpush3.bf16.msra.mxu1 %v619_v11  ;;  %v555_v36 = vld [vmem:[%s759_s6] ss:$0 sm:$0xff] }
  0x14   : > { %590 = vmatprep.subr.bf16.mxu1 %v636_v8 }
  0x17   : > { %591 = vmatpush3.bf16.msra.mxu1 %v620_v12 }
  0x18   : > { %592 = vmatprep.subr.bf16.mxu1 %v636_v8 }
  0x1b   : > { %593 = vmatpush3.bf16.msra.mxu1 %v621_v13 }
  0x1c   : > { %594 = vmatprep.subr.bf16.mxu1 %v636_v8 }
  0x1f   : > { %595 = vmatpush3.bf16.msra.mxu1 %v622_v14 }
  0x20   : > { %596 = vmatprep.subr.bf16.mxu1 %v636_v8 }
  0x23   : > { %597 = vmatpush3.bf16.msra.mxu1 %v623_v15 }
  0x24   : > { %598 = vmatprep.subr.bf16.mxu1 %v636_v8 }
  0x27   : > { %599 = vmatpush3.bf16.msra.mxu1 %v624_v26 }
  0x28   : > { %600 = vmatprep.subr.bf16.mxu1 %v636_v8 }
  0x2b   : > { %601 = vmatpush3.bf16.msra.mxu1 %v625_v27 }
  0x99   : > { %v279_v2 = vpop.xlane.xlu0 %278 }
  0x9a   : > { %v281_v3 = vmul.f32 0.03125, %v279_v2 }
  0x9c   : > { %v282_v4 = vsub.f32 %v694_v0, %v281_v3 }
  0x9e   : > { %v283_v5 = vmul.f32 %v282_v4, %v282_v4 }
  0xa0   : > { %v284_v6 = vsel %vm276_vm0, %v283_v5, 0.0 }
  0xa1   : > { %285 = vadd.xlane.f32.xlu0 %v284_v6 }
 0x12a   : > { %v286_v16 = vpop.xlane.xlu0 %285 }
 0x12b   : > { %v287_v17 = vmul.f32 0.03125, %v286_v16 }
 0x12d   : > { %v288_v18 = vadd.f32 1e-05, %v287_v17 }
 0x12f   : > { %626 = vrsqrt.f32 %v288_v18 }
 0x13c   : > { %v627_v19 = vpop.eup %626 }
 0x13d   : > { %v290_v21 = vmul.f32 %v627_v19, %v282_v4 }
 0x13f   : > { %v298_v23 = vmul.f32 %v549_v20, %v290_v21 }
 0x141   : > { %v306_v24 = vadd.f32 %v550_v22, %v298_v23 }
 0x143   : > { %v307_v25 = vpack.c.bf16 %v306_v24, %v306_v24 }
 0x145   : > { %583 = vmatmul.mubr.msk.bf16.vlgmr.msra.gmra.mxu0 %vm276_vm0, %v307_v25 }
 0x205   : > { %v368_v29 = vpop.f32.mrf.mxu0 }
 0x206   : > { %v369_v30 = vadd.f32 %v551_v28, %v368_v29 }
 0x207   : > { %v584_v31 = vpop.f32.mrf.mxu0 }
 0x208   : > { %v374_v32 = vmax.f32 %v369_v30, 0.0 }
 0x209   : > { %v371_v33 = vpop.f32.mrf.mxu0 }
 0x20a   : > { %v375_v34 = vpack.c.bf16 %v374_v32, %v374_v32 }
 0x20b   : > { %v585_v35 = vpop.f32.mrf.mxu0 }
 0x20c   : > { %603 = vmatmul.mubr.bf16.vlgmr.msra.gmra.mxu1 %v375_v34 }
 0x2cc   : > { %v481_v37 = vpop.f32.mrf.mxu1 }
 0x2cd   : > { %v482_v38 = vadd.f32 %v555_v36, %v481_v37 }
 0x2ce   : > { %v604_v39 = vpop.f32.mrf.mxu1 }
 0x2cf   : > { %v487_v40 = vadd.f32 %v482_v38, %v694_v0 }
 0x2d0   : > { %v484_v41 = vpop.f32.mrf.mxu1 }
 0x2d1   : > { %488 = vst.msk [vmem:[%s273_s17] sm:$0xff] %vm276_vm0, %v487_v40 }
 0x2d2   : > { %v605_v42 = vpop.f32.mrf.mxu1 }
 0x2d3 PF: > { %s17_s24 = sadd.s32 1, %s634_s24  }
 0x2d4   : > { %p14_p4 = scmp.ge.s32.totalorder %s17_s24, 4  }
 0x2d6   :  { %16 = sbr.rel (!%p14_p4) target bundleno = 1 (0x1), region = 78 }

// kernel: tb_forward.5
= control target key start
LH: loop header
LB: loop body
LE: loop exit
PB: predicated region body
PF: predicated region fallthrough
CT: control target
= control target key end

     0   :  { %s1387_s27 = smov 0   ;;  %s1549_s0 = inlined_call_operand.vmem [shape: f32[2,8,32], index: 0, kind: input, shape index: {}]   ;;  %s1550_s1 = inlined_call_operand.vmem [shape: f32[2,1,8], index: 1, kind: input, shape index: {}]   ;;  %s1551_s2 = inlined_call_operand.vmem [shape: f32[1,32], index: 2, kind: input, shape index: {}]   ;;  %s1552_s3 = inlined_call_operand.vmem [shape: f32[1,32], index: 3, kind: input, shape index: {}]   ;;  %s1553_s4 = inlined_call_operand.vmem [shape: bf16[32,96], index: 4, kind: input, shape index: {}]   ;;  %s1554_s5 = inlined_call_operand.vmem [shape: f32[1,96], index: 5, kind: input, shape index: {}]   ;;  %s1555_s6 = inlined_call_operand.vmem [shape: bf16[4,8,32], index: 6, kind: input, shape index: {}]   ;;  %s1556_s7 = inlined_call_operand.vmem [shape: f32[1,32], index: 7, kind: input, shape index: {}]   ;;  %s1557_s8 = inlined_call_operand.vmem [shape: f32[2,8,32], index: 8, kind: output, shape index: {}]  }
   0x1 LB: > { %s1141_s28 = sadd.s32 4294967295, %s1327_s27   ;;  %p1145_p0 = scmp.ge.s32.totalorder %s1327_s27, 1  ;;  %s1327_s27 = sphi %s1387_s27, %s18_s27  }
   0x2   : > { %p269_p1 = scmp.lt.s32.totalorder %s1327_s27, 3 }
   0x4   : > { %p270_p2 = pnand %p1145_p0, %p269_p1 }
   0x5   : > { %p304_p3 = scmp.lt.s32.totalorder (!%p270_p2), %s1141_s28, 1  ;;  %s1331_s21 = smov (!%p270_p2), 120  }
   0x6   : > { %273 = sbr.rel (%p270_p2) target bundleno = 2792 (0xae8), region = 52  ;;  %s1332_s22 = smov (!%p270_p2), 96  }
   0x7   : > { %s1333_s23 = smov (!%p270_p2), 88   ;;  %s1334_s30 = smov (!%p270_p2), 56  }
   0x8   : > { %s1335_s9 = smov (!%p270_p2), 64   ;;  %s1337_s11 = smov (!%p270_p2), 112  }
   0x9   : > { %s1338_s16 = smov (!%p270_p2), 48   ;;  %s1339_s17 = smov (!%p270_p2), 104  }
   0xa   : > { %s1340_s18 = smov (!%p270_p2), 72  }
   0xb   : > { %s1559_s28 = smov (!%p304_p3, %s1141_s28), 1  ;;  %vm317_vm0 = vcmask 261120   ;;  %v1301_v7 = vld [vmem:[%s1553_s4 + $0x8] sm:$0xff]   ;;  %v1329_v8 = vmov 0.0   ;;  %vm1330_vm1 = vmmov 0   ;;  %v1302_v9 = vld [vmem:[%s1553_s4] sm:$0xff]  }
   0xc   : > { %s1146_s29 = sshll.u32 %s1559_s28, 3  ;;  %1200 = vmatprep.subr.bf16.mxu0 %v1329_v8  ;;  %1204 = vmatprep.mubr.msk.bf16.mxu0 %vm1330_vm1, %v1329_v8  ;;  %v1148_v14 = vld [vmem:[%s1551_s2] ss:$0 sm:$0xff]  ;;  %vm420_vm2 = vcmask 64512   ;;  %s310_s26 = scalar_lea.vmem %s1550_s1, %s1559_s28  ;;  %vm492_vm3 = vcmask 1043456  }
   0xd   : > { %s307_s10 = scalar_lea.vmem %s1549_s0, %s1146_s29  ;;  %1201 = vmatpush3.bf16.msra.mxu0 %v1301_v7  ;;  %1208 = vmatprep.subr.bf16.mxu1 %v1329_v8  ;;  %v1149_v16 = vld [vmem:[%s1552_s3] ss:$0 sm:$0xff] }
   0xe   : > { %v1403_v0 = vld [vmem:[%s307_s10] sm:$0xff]  ;;  %1202 = vmatprep.subr.bf16.mxu0 %v1329_v8  ;;  %1210 = vmatprep.mubr.msk.bf16.mxu1 %vm1330_vm1, %v1329_v8  ;;  %s1336_s10 = smov 80  }
   0xf   : > { %v318_v1 = vsel %vm317_vm0, %v1403_v0, 0.0  ;;  %v1150_v20 = vld [vmem:[%s1554_s5] ss:$0 sm:$0xff] }
  0x10   : > { %319 = vadd.xlane.f32.xlu0 %v318_v1  ;;  %v1455_v33 = vld [vmem:[%s310_s26] ss:$0 sm:$0xff] }
  0x11   : > { %1203 = vmatpush3.bf16.msra.mxu0 %v1302_v9  ;;  %v1159_v9 = vld [vmem:[%s1555_s6 + $0x4] sm:$0xf] }
  0x12   : > { %1214 = vmatprep.subr.bf16.mxu0 %v1329_v8 }
  0x99   : > { %v320_v2 = vpop.xlane.xlu0 %319 }
  0x9a   : > { %v322_v3 = vmul.f32 0.03125, %v320_v2 }
  0x9c   : > { %v323_v4 = vsub.f32 %v1403_v0, %v322_v3 }
  0x9e   : > { %v324_v5 = vmul.f32 %v323_v4, %v323_v4 }
  0xa0   : > { %v325_v6 = vsel %vm317_vm0, %v324_v5, 0.0 }
  0xa1   : > { %326 = vadd.xlane.f32.xlu0 %v325_v6  ;;  %v537_v6 = vld [vmem:[%s1555_s6] sm:$0xf] }
  0xa2   : > { %v703_v7 = vsel %vm492_vm3, %v537_v6, 0 }
 0x12a   : > { %v327_v10 = vpop.xlane.xlu0 %326 }
 0x12b   : > { %v328_v11 = vmul.f32 0.03125, %v327_v10  ;;  %v657_v10 = vsel %vm492_vm3, %v1159_v9, 0 }
 0x12d   : > { %v329_v12 = vadd.f32 1e-05, %v328_v11 }
 0x12f   : > { %1303 = vrsqrt.f32 %v329_v12 }
 0x13c   : > { %v1304_v13 = vpop.eup %1303 }
 0x13d   : > { %v331_v15 = vmul.f32 %v1304_v13, %v323_v4 }
 0x13f   : > { %v339_v17 = vmul.f32 %v1148_v14, %v331_v15 }
 0x141   : > { %v347_v18 = vadd.f32 %v1149_v16, %v339_v17 }
 0x143   : > { %v348_v19 = vpack.c.bf16 %v347_v18, %v347_v18 }
 0x145   : > { %1205 = vmatmul.mubr.msk.bf16.vlgmr.msra.gmra.mxu0 %vm317_vm0, %v348_v19 }
 0x146   : > { %1216 = vmatprep.mubr.msk.bf16.mxu0 %vm1330_vm1, %v1329_v8 }
 0x205   : > { %v409_v21 = vpop.f32.mrf.mxu0 }
 0x206   : > { %v410_v22 = vadd.f32 %v1150_v20, %v409_v21 }
 0x207   : > { %v1206_v23 = vpop.f32.mrf.mxu0 }
 0x208   : > { %v1435_v24 = vpack.c.bf16 %v410_v22, %v410_v22 }
 0x209   : > { %v412_v25 = vpop.f32.mrf.mxu0 }
 0x20a   : > { %538 = vrot.lane.b32.xlu0 %v1435_v24, %s1331_s21  ;;  %418 = vrot.lane.b32.xlu1 %v1435_v24, %s1332_s22  ;;  %s1341_s21 = smov 40  }
 0x20b   : > { %v1207_v26 = vpop.f32.mrf.mxu0 }
 0x20e   : > { %540 = vrot.lane.b32.xlu1 %v1435_v24, %s1333_s23 }
 0x27c   : > { %v419_v27 = vpop.permute.xlu1 %418  ;;  %v539_v31 = vpop.permute.xlu0 %538 }
 0x27d   : > { %v425_v28 = vsel %vm420_vm2, %v419_v27, 0 }
 0x27e   : > { %1209 = vmatpush3.bf16.xpose.msra.mxu1 %v425_v28 }
 0x27f   : > { %1220 = vmatprep.subr.bf16.mxu1 %v1329_v8 }
 0x280   : > { %v541_v29 = vpop.permute.xlu1 %540 }
 0x281   : > { %v546_v30 = vsel %vm420_vm2, %v541_v29, 0 }
 0x285   : > { %1211 = vmatmul.mubr.msk.bf16.vlgmr.msra.gmra.mxu1 %vm420_vm2, %v1435_v24 }
 0x286   : > { %1221 = vmatpush3.bf16.xpose.msra.mxu1 %v546_v30  ;;  %1222 = vmatprep.mubr.msk.bf16.mxu1 %vm1330_vm1, %v1329_v8 }
 0x287   : > { %1232 = vmatprep.subr.bf16.mxu1 %v1329_v8 }
 0x28d   : > { %1223 = vmatmul.mubr.msk.bf16.vlgmr.msra.gmra.mxu1 %vm420_vm2, %v539_v31 }
 0x28e   : > { %1234 = vmatprep.mubr.msk.bf16.mxu1 %vm1330_vm1, %v1329_v8  ;;  %1233 = vmatpush3.bf16.msra.mxu1 %v657_v10 }
 0x28f   : > { %1244 = vmatprep.subr.bf16.mxu1 %v1329_v8 }
 0x345   : > { %v461_v32 = vpop.f32.mrf.mxu1 }
 0x346   : > { %v467_v34 = vmul.f32 0.35355338, %v461_v32 }
 0x347   : > { %v1212_v35 = vpop.f32.mrf.mxu1 }
 0x348   : > { %v474_v36 = vadd.f32 %v1455_v33, %v467_v34 }
 0x349   : > { %v464_v37 = vpop.f32.mrf.mxu1 }
 0x34a   : > { %v475_v38 = vsel %vm420_vm2, %v474_v36, -inf }
 0x34b   : > { %476 = vmax.xlane.f32.xlu1 %v475_v38  ;;  %v1213_v39 = vpop.f32.mrf.mxu1 }
 0x34d   : > { %v582_v40 = vpop.f32.mrf.mxu1 }
 0x34e   : > { %v588_v41 = vmul.f32 0.35355338, %v582_v40 }
 0x34f   : > { %v1224_v42 = vpop.f32.mrf.mxu1 }
 0x350   : > { %v589_v43 = vadd.f32 %v1455_v33, %v588_v41 }
 0x351   : > { %v585_v44 = vpop.f32.mrf.mxu1 }
 0x352   : > { %v590_v45 = vsel %vm420_vm2, %v589_v43, -inf }
 0x353   : > { %591 = vmax.xlane.f32.xlu0 %v590_v45  ;;  %v1225_v46 = vpop.f32.mrf.mxu1 }
 0x369   : > { %602 = vrot.lane.b32.xlu0 %v1435_v24, %s1334_s30 }
 0x3d4   : > { %v477_v47 = vpop.xlane.xlu1 %476 }
 0x3d5   : > { %v478_v48 = vsub.f32 %v474_v36, %v477_v47 }
 0x3d7   : > { %v479_v49 = vmul.f32 1.442695, %v478_v48 }
 0x3d9   : > { %1305 = vpow2.f32 %v479_v49 }
 0x3dc   : > { %v592_v50 = vpop.xlane.xlu0 %591 }
 0x3dd   : > { %v593_v51 = vsub.f32 %v589_v43, %v592_v50 }
 0x3df   : > { %v594_v52 = vmul.f32 1.442695, %v593_v51 }
 0x3e0   : > { %v603_v63 = vpop.permute.xlu0 %602 }
 0x3e1   : > { %1307 = vpow2.f32 %v594_v52  ;;  %v608_v2 = vsel %vm492_vm3, %v603_v63, 0 }
 0x3e6   : > { %v1306_v53 = vpop.eup %1305 }
 0x3e7   : > { %v481_v54 = vsel %vm420_vm2, %v1306_v53, 0.0 }
 0x3e8   : > { %482 = vadd.xlane.f32.xlu1 %v481_v54 }
 0x3ee   : > { %v1308_v55 = vpop.eup %1307 }
 0x3ef   : > { %v596_v56 = vsel %vm420_vm2, %v1308_v55, 0.0 }
 0x3f0   : > { %597 = vadd.xlane.f32.xlu1 %v596_v56  ;;  %v1164_v56 = vld [vmem:[%s1555_s6 + $0x8] sm:$0xf] }
 0x401   : > { %487 = vrot.lane.b32.xlu1 %v1435_v24, %s1335_s9  ;;  %s314_s9 = scalar_lea.vmem %s1557_s8, %s1146_s29 }
 0x405   : > { %747 = vrot.lane.b32.xlu1 %v1435_v24, %s1336_s10 }
 0x409   : > { %745 = vrot.lane.b32.xlu1 %v1435_v24, %s1337_s11 }
 0x471   : > { %v483_v57 = vpop.xlane.xlu1 %482 }
 0x472   : > { %1309 = vrcp.f32 %v483_v57  ;;  %v864_v57 = vsel %vm492_vm3, %v1164_v56, 0 }
 0x479   : > { %v598_v58 = vpop.xlane.xlu1 %597 }
 0x47a   : > { %1311 = vrcp.f32 %v598_v58 }
 0x47d   : > { %v488_v59 = vpop.permute.xlu1 %487 }
 0x47e   : > { %v494_v60 = vsel %vm492_vm3, %v488_v59, 0 }
 0x47f   : > { %v1310_v61 = vpop.eup %1309  ;;  %1215 = vmatpush3.bf16.msra.mxu0 %v494_v60 }
 0x480   : > { %1226 = vmatprep.subr.bf16.mxu0 %v1329_v8  ;;  %v485_v62 = vmul.f32 %v1310_v61, %v1306_v53 }
 0x481   : > { %v748_v16 = vpop.permute.xlu1 %747 }
 0x482   : > { %v486_v1 = vpack.c.bf16 %v485_v62, %v485_v62  ;;  %v753_v20 = vsel %vm420_vm2, %v748_v16, 0 }
 0x484   : > { %1217 = vmatmul.mubr.msk.bf16.vlgmr.msra.gmra.mxu0 %vm420_vm2, %v486_v1 }
 0x485   : > { %1227 = vmatpush3.bf16.msra.mxu0 %v608_v2  ;;  %1228 = vmatprep.mubr.msk.bf16.mxu0 %vm1330_vm1, %v1329_v8  ;;  %v746_v23 = vpop.permute.xlu1 %745 }
 0x486   : > { %1238 = vmatprep.subr.bf16.mxu0 %v1329_v8 }
 0x487   : > { %v1312_v3 = vpop.eup %1311 }
 0x488   : > { %v600_v4 = vmul.f32 %v1312_v3, %v1308_v55 }
 0x48a   : > { %v601_v5 = vpack.c.bf16 %v600_v4, %v600_v4 }
 0x48c   : > { %1229 = vmatmul.mubr.msk.bf16.vlgmr.msra.gmra.mxu0 %vm420_vm2, %v601_v5 }
 0x48d   : > { %1240 = vmatprep.mubr.msk.bf16.mxu0 %vm1330_vm1, %v1329_v8  ;;  %1239 = vmatpush3.bf16.msra.mxu0 %v703_v7 }
 0x48e   : > { %1250 = vmatprep.subr.bf16.mxu0 %v1329_v8 }
 0x544   : > { %v530_v11 = vpop.f32.mrf.mxu0 }
 0x545   : > { %v536_v12 = vpack.c.bf16 %v530_v11, %v530_v11 }
 0x546   : > { %v1218_v13 = vpop.f32.mrf.mxu0 }
 0x547   : > { %1241 = vmatmul.mubr.msk.bf16.vlgmr.msra.gmra.mxu0 %vm420_vm2, %v536_v12 }
 0x548   : > { %v533_v14 = vpop.f32.mrf.mxu0  ;;  %1252 = vmatprep.mubr.msk.bf16.mxu0 %vm1330_vm1, %v1329_v8 }
 0x54a   : > { %v1219_v15 = vpop.f32.mrf.mxu0 }
 0x54b   : > { %v1168_v15 = vld [vmem:[%s1555_s6 + $0xc] sm:$0xf] }
 0x54c   : > { %v644_v17 = vpop.f32.mrf.mxu0  ;;  %v1026_v16 = vsel %vm492_vm3, %v1168_v15, 0 }
 0x54d   : > { %v650_v18 = vpack.c.bf16 %v644_v17, %v644_v17 }
 0x54e   : > { %v1230_v19 = vpop.f32.mrf.mxu0 }
 0x54f   : > { %1235 = vmatmul.mubr.msk.bf16.vlgmr.msra.gmra.mxu1 %vm420_vm2, %v650_v18 }
 0x550   : > { %1245 = vmatpush3.bf16.xpose.msra.mxu1 %v753_v20  ;;  %v647_v21 = vpop.f32.mrf.mxu0  ;;  %1246 = vmatprep.mubr.msk.bf16.mxu1 %vm1330_vm1, %v1329_v8 }
 0x551   : > { %1256 = vmatprep.subr.bf16.mxu1 %v1329_v8 }
 0x552   : > { %v1231_v22 = vpop.f32.mrf.mxu0 }
 0x557   : > { %1247 = vmatmul.mubr.msk.bf16.vlgmr.msra.gmra.mxu1 %vm420_vm2, %v746_v23 }
 0x558   : > { %1258 = vmatprep.mubr.msk.bf16.mxu1 %vm1330_vm1, %v1329_v8  ;;  %1257 = vmatpush3.bf16.msra.mxu1 %v864_v57 }
 0x559   : > { %1268 = vmatprep.subr.bf16.mxu1 %v1329_v8 }
 0x607   : > { %v739_v25 = vpop.f32.mrf.mxu0 }
 0x609   : > { %v1242_v26 = vpop.f32.mrf.mxu0 }
 0x60b   : > { %v742_v27 = vpop.f32.mrf.mxu0 }
 0x60d   : > { %v1243_v28 = vpop.f32.mrf.mxu0 }
 0x60f   : > { %v693_v29 = vpop.f32.mrf.mxu1 }
 0x610   : > { %v1498_v30 = vadd.f32 %v739_v25, %v693_v29 }
 0x611   : > { %v1236_v31 = vpop.f32.mrf.mxu1 }
 0x612   : > { %v1170_v31 = vld [vmem:[%s1556_s7] ss:$0 sm:$0xff] }
 0x613   : > { %v696_v32 = vpop.f32.mrf.mxu1 }
 0x615   : > { %v1237_v34 = vpop.f32.mrf.mxu1 }
 0x617   : > { %v789_v35 = vpop.f32.mrf.mxu1 }
 0x618   : > { %v795_v36 = vmul.f32 0.35355338, %v789_v35 }
 0x619   : > { %v1248_v37 = vpop.f32.mrf.mxu1 }
 0x61a   : > { %v796_v38 = vadd.f32 %v1455_v33, %v795_v36 }
 0x61b   : > { %v792_v39 = vpop.f32.mrf.mxu1 }
 0x61c   : > { %v797_v40 = vsel %vm420_vm2, %v796_v38, -inf }
 0x61d   : > { %798 = vmax.xlane.f32.xlu1 %v797_v40  ;;  %v1249_v41 = vpop.f32.mrf.mxu1 }
 0x62e   : > { %809 = vrot.lane.b32.xlu1 %v1435_v24, %s1338_s16 }
 0x632   : > { %907 = vrot.lane.b32.xlu1 %v1435_v24, %s1339_s17 }
 0x6a6   : > { %v799_v42 = vpop.xlane.xlu1 %798 }
 0x6a7   : > { %v800_v43 = vsub.f32 %v796_v38, %v799_v42 }
 0x6a9   : > { %v801_v44 = vmul.f32 1.442695, %v800_v43 }
 0x6aa   : > { %v810_v45 = vpop.permute.xlu1 %809 }
 0x6ab   : > { %1313 = vpow2.f32 %v801_v44  ;;  %v815_v46 = vsel %vm492_vm3, %v810_v45, 0 }
 0x6ac   : > { %1251 = vmatpush3.bf16.msra.mxu0 %v815_v46 }
 0x6ad   : > { %1262 = vmatprep.subr.bf16.mxu0 %v1329_v8 }
 0x6ae   : > { %v908_v55 = vpop.permute.xlu1 %907 }
 0x6b8   : > { %v1314_v47 = vpop.eup %1313 }
 0x6b9   : > { %v803_v48 = vsel %vm420_vm2, %v1314_v47, 0.0 }
 0x6ba   : > { %804 = vadd.xlane.f32.xlu0 %v803_v48 }
 0x6d0   : > { %909 = vrot.lane.b32.xlu0 %v1435_v24, %s1340_s18 }
 0x743   : > { %v805_v49 = vpop.xlane.xlu0 %804 }
 0x744   : > { %1315 = vrcp.f32 %v805_v49 }
 0x747   : > { %v910_v52 = vpop.permute.xlu0 %909 }
 0x748   : > { %v915_v54 = vsel %vm420_vm2, %v910_v52, 0 }
 0x751   : > { %v1316_v50 = vpop.eup %1315 }
 0x752   : > { %v807_v51 = vmul.f32 %v1316_v50, %v1314_v47 }
 0x754   : > { %v808_v53 = vpack.c.bf16 %v807_v51, %v807_v51 }
 0x756   : > { %1253 = vmatmul.mubr.msk.bf16.vlgmr.msra.gmra.mxu0 %vm420_vm2, %v808_v53 }
 0x757   : > { %1263 = vmatpush3.bf16.xpose.msra.mxu0 %v915_v54  ;;  %1264 = vmatprep.mubr.msk.bf16.mxu0 %vm1330_vm1, %v1329_v8 }
 0x758   : > { %1274 = vmatprep.subr.bf16.mxu0 %v1329_v8 }
 0x75e   : > { %1265 = vmatmul.mubr.msk.bf16.vlgmr.msra.gmra.mxu0 %vm420_vm2, %v908_v55 }
 0x75f   : > { %1276 = vmatprep.mubr.msk.bf16.mxu0 %vm1330_vm1, %v1329_v8  ;;  %1275 = vmatpush3.bf16.msra.mxu0 %v1026_v16 }
 0x816   : > { %v851_v58 = vpop.f32.mrf.mxu0 }
 0x817   : > { %v857_v59 = vpack.c.bf16 %v851_v58, %v851_v58 }
 0x818   : > { %v1254_v60 = vpop.f32.mrf.mxu0 }
 0x819   : > { %1259 = vmatmul.mubr.msk.bf16.vlgmr.msra.gmra.mxu1 %vm420_vm2, %v857_v59 }
 0x81a   : > { %v854_v61 = vpop.f32.mrf.mxu0  ;;  %1270 = vmatprep.mubr.msk.bf16.mxu1 %vm1330_vm1, %v1329_v8 }
 0x81c   : > { %v1255_v62 = vpop.f32.mrf.mxu0 }
 0x81e   : > { %v951_v63 = vpop.f32.mrf.mxu0 }
 0x81f   : > { %v957_v1 = vmul.f32 0.35355338, %v951_v63 }
 0x820   : > { %v1266_v2 = vpop.f32.mrf.mxu0 }
 0x821   : > { %v958_v3 = vadd.f32 %v1455_v33, %v957_v1 }
 0x822   : > { %v954_v4 = vpop.f32.mrf.mxu0 }
 0x823   : > { %v959_v5 = vsel %vm420_vm2, %v958_v3, -inf }
 0x824   : > { %960 = vmax.xlane.f32.xlu1 %v959_v5  ;;  %v1267_v6 = vpop.f32.mrf.mxu0 }
 0x8ad   : > { %v961_v7 = vpop.xlane.xlu1 %960 }
 0x8ae   : > { %v962_v9 = vsub.f32 %v958_v3, %v961_v7 }
 0x8b0   : > { %v963_v10 = vmul.f32 1.442695, %v962_v9 }
 0x8b2   : > { %1317 = vpow2.f32 %v963_v10 }
 0x8bf   : > { %v1318_v11 = vpop.eup %1317 }
 0x8c0   : > { %v965_v12 = vsel %vm420_vm2, %v1318_v11, 0.0 }
 0x8c1   : > { %966 = vadd.xlane.f32.xlu0 %v965_v12 }
 0x8d7   : > { %971 = vrot.lane.b32.xlu0 %v1435_v24, %s1341_s21 }
 0x8d9   : > { %v900_v8 = vpop.f32.mrf.mxu1 }
 0x8da   : > { %v906_v13 = vadd.f32 %v900_v8, %v1498_v30 }
 0x8db   : > { %v1260_v33 = vpop.f32.mrf.mxu1 }
 0x8dd   : > { %v903_v14 = vpop.f32.mrf.mxu1 }
 0x8df   : > { %v1261_v17 = vpop.f32.mrf.mxu1 }
 0x94a   : > { %v967_v18 = vpop.xlane.xlu0 %966 }
 0x94b   : > { %1319 = vrcp.f32 %v967_v18 }
 0x94e   : > { %v972_v19 = vpop.permute.xlu0 %971 }
 0x94f   : > { %v977_v20 = vsel %vm492_vm3, %v972_v19, 0 }
 0x950   : > { %1269 = vmatpush3.bf16.msra.mxu1 %v977_v20 }
 0x958   : > { %v1320_v24 = vpop.eup %1319 }
 0x959   : > { %v969_v21 = vmul.f32 %v1320_v24, %v1318_v11 }
 0x95b   : > { %v970_v22 = vpack.c.bf16 %v969_v21, %v969_v21 }
 0x95d   : > { %1271 = vmatmul.mubr.msk.bf16.vlgmr.msra.gmra.mxu1 %vm420_vm2, %v970_v22 }
 0xa1d   : > { %v1013_v23 = vpop.f32.mrf.mxu1 }
 0xa1e   : > { %v1019_v25 = vpack.c.bf16 %v1013_v23, %v1013_v23 }
 0xa1f   : > { %v1272_v26 = vpop.f32.mrf.mxu1 }
 0xa20   : > { %1277 = vmatmul.mubr.msk.bf16.vlgmr.msra.gmra.mxu0 %vm420_vm2, %v1019_v25 }
 0xa21   : > { %v1016_v27 = vpop.f32.mrf.mxu1 }
 0xa23   : > { %v1273_v28 = vpop.f32.mrf.mxu1 }
 0xae0   : > { %v1062_v29 = vpop.f32.mrf.mxu0 }
 0xae1   : > { %v1068_v30 = vadd.f32 %v1062_v29, %v906_v13 }
 0xae2   : > { %v1278_v32 = vpop.f32.mrf.mxu0 }
 0xae3   : > { %v1069_v34 = vadd.f32 %v1068_v30, %v1403_v0 }
 0xae4   : > { %v1065_v35 = vpop.f32.mrf.mxu0 }
 0xae5   : > { %v1077_v36 = vadd.f32 %v1170_v31, %v1069_v34 }
 0xae6   : > { %v1279_v37 = vpop.f32.mrf.mxu0 }
 0xae7   : > { %1078 = vst.msk [vmem:[%s314_s9] sm:$0xff] %vm317_vm0, %v1077_v36 }
 0xae8 PF: > { %s18_s27 = sadd.s32 1, %s1327_s27  }
 0xae9   : > { %p15_p4 = scmp.ge.s32.totalorder %s18_s27, 4  }
 0xaeb   :  { %17 = sbr.rel (!%p15_p4) target bundleno = 1 (0x1), region = 88 }

// kernel: tb_forward.9
= control target key start
LH: loop header
LB: loop body
LE: loop exit
PB: predicated region body
PF: predicated region fallthrough
CT: control target
= control target key end

     0   :  { %12 = vsyncpa [#allocation4], 0  ;;  %s1614_s0 = inlined_call_operand.vmem [shape: f32[2,8,32], index: 0, kind: input, shape index: {}]   ;;  %s1615_s1 = inlined_call_operand.vmem [shape: f32[1,32], index: 1, kind: input, shape index: {}]   ;;  %s1616_s2 = inlined_call_operand.vmem [shape: f32[1,32], index: 2, kind: input, shape index: {}]   ;;  %s1617_s3 = inlined_call_operand.vmem [shape: bf16[8,32,32], index: 3, kind: input, shape index: {}]   ;;  %s1618_s4 = inlined_call_operand.vmem [shape: f32[1,32], index: 4, kind: input, shape index: {}]   ;;  %s1619_s5 = inlined_call_operand.vmem [shape: bf16[32,3], index: 5, kind: input, shape index: {}]   ;;  %s1620_s6 = inlined_call_operand.vmem [shape: f32[1,3], index: 6, kind: input, shape index: {}]   ;;  %s1621_s7 = inlined_call_operand.hbm [shape: f32[2,1,3], index: 7, kind: output, shape index: {}]  }
   0x1   :  { %14 = vsyncpa [#allocation4 + $0x1], 0  ;;  %s1387_s24 = smov 0   ;;  %s1389_s25 = smov 0  }
   0x2   :  { %s1391_s26 = smov 0   ;;  %s1393_s27 = smov 0  }
   0x3   :  { %s1395_s28 = smov 0   ;;  %s1397_s29 = smov 0  }
   0x4 LB: > { %s1023_s30 = sadd.s32 4294967295, %s1342_s29   ;;  %s1024_s8 = sadd.s32 4294967294, %s1342_s29   ;;  %s1342_s29 = sphi %s1397_s29, %s20_s29   ;;  %s1338_s28 = sphi %s1395_s28, %s1628_s28   ;;  %s1334_s27 = sphi %s1393_s27, %s1627_s27   ;;  %s1330_s26 = sphi %s1391_s26, %s1626_s26   ;;  %s1326_s25 = sphi %s1389_s25, %s1625_s25   ;;  %s1322_s24 = sphi %s1387_s24, %s1624_s24  }
   0x5   : > { %s32_s9 = sadd.s32 1, %s1338_s28  ;;  %s198_s10 = sadd.s32 1, %s1330_s26 }
   0x6   : > { %p34_p0 = scmp.ge.s32.totalorder %s32_s9, 2  ;;  %p208_p1 = scmp.ne.s32.totalorder %s1330_s26, %s1326_s25 }
   0x7   : > { %p209_p2 = scmp.eq.s32.totalorder %s1023_s30, 1  ;;  %p214_p3 = scmp.ne.s32.totalorder %s1326_s25, %s1322_s24 }
   0x8   : > { %s1630_s9 = smov (%p34_p0, %s32_s9), 0  ;;  %p215_p5 = scmp.eq.s32.totalorder %s1024_s8, 1 }
   0x9   : > { %p1427_p4 = por %p209_p2, %p208_p1  ;;  %s195_s12 = ssub.s32 %s1338_s28, %s1630_s9 }
   0xa   : > { %p1028_p6 = scmp.ge.s32.totalorder %s1342_s29, 1  ;;  %p196_p7 = scmp.eq.s32.totalorder %s195_s12, 0 }
   0xb   : > { %p1434_p8 = por %p215_p5, %p214_p3  ;;  %p268_p9 = scmp.lt.s32.totalorder %s1342_s29, 3 }
   0xc   : > { %s1440_s14 = scalar_select %p196_p7, %s1330_s26, %s198_s10  }
   0xd   : > { %p269_p10 = pnand %p1028_p6, %p268_p9 }
   0xe   : > { %p307_p11 = scmp.lt.s32.totalorder (!%p269_p10), %s1334_s27, 1  ;;  %s305_s23 = sand.u32 (!%p269_p10), 1, %s1326_s25  }
   0xf   : > { %272 = sbr.rel (%p269_p10) target bundleno = 783 (0x30f), region = 48  ;;  %s1087_s10 = sshll.u32 (!%p269_p10), %s1334_s27, 4 }
  0x10   : > { %s306_s12 = scalar_lea.vmem (!%p269_p10), [#allocation3], %s305_s23  ;;  %s1568_s18 = scalar_lea.hbm (!%p269_p10), %s1621_s7, %s1087_s10 }
  0x11   : > { %s1346_s20 = smov (!%p269_p10), [#allocation3]  }
  0x12   : > { %s1270_s21 = sshll.u32 (!%p269_p10), %s1346_s20, 4  ;;  %s1271_s21 = int_to_ptr.vmem [resolvable:$false] %s1270_s21 }
  0x13   : > { %s1272_s22 = scalar_lea.vmem (!%p269_p10), %s1271_s21, 32 }
  0x14   : > { %s308_s15 = scalar_select %p307_p11, %s1334_s27, 1  ;;  %vm329_vm0 = vcmask 261120   ;;  %v1246_v7 = vld [vmem:[%s1617_s3 + $0x8] sm:$0xff]   ;;  %v1344_v8 = vmov 0.0   ;;  %v1247_v9 = vld [vmem:[%s1617_s3 + $0x18] sm:$0xff]   ;;  %v1248_v10 = vld [vmem:[%s1617_s3] sm:$0xff]  }
  0x15   : > { %1125 = vmatprep.subr.bf16.mxu1 %v1344_v8  ;;  %1117 = vmatprep.subr.bf16.mxu0 %v1344_v8  ;;  %vm1345_vm1 = vmmov 0   ;;  %v1249_v11 = vld [vmem:[%s1617_s3 + $0x10] sm:$0xff]   ;;  %v1030_v16 = vld [vmem:[%s1615_s1] ss:$0 sm:$0xff]  ;;  %v1250_v21 = vld [vmem:[%s1617_s3 + $0x38] sm:$0xff]   ;;  %vm326_vm2 = vcmask 253952  }
  0x16   : > { %s1029_s16 = sshll.u32 %s308_s15, 3  ;;  %1126 = vmatpush3.bf16.msra.mxu1 %v1246_v7  ;;  %1129 = vmatprep.mubr.msk.bf16.mxu1 %vm1345_vm1, %v1344_v8  ;;  %v1031_v18 = vld [vmem:[%s1616_s2] ss:$0 sm:$0xff]  ;;  %v1251_v23 = vld [vmem:[%s1617_s3 + $0x28] sm:$0xff]   ;;  %v1252_v25 = vld [vmem:[%s1617_s3 + $0x30] sm:$0xff]   ;;  %s942_s15 = sshll.u32 %s306_s12, 4  ;;  %s1570_s15 = int_to_ptr.vmem [resolvable:$true] %s942_s15 }
  0x17   : > { %s313_s19 = scalar_lea.vmem %s1614_s0, %s1029_s16  ;;  %1118 = vmatpush3.bf16.msra.mxu0 %v1247_v9  ;;  %1127 = vmatprep.subr.bf16.mxu1 %v1344_v8  ;;  %v1253_v26 = vld [vmem:[%s1617_s3 + $0x20] sm:$0xff]   ;;  %v1254_v27 = vld [vmem:[%s1617_s3 + $0x58] sm:$0xff]   ;;  %v1255_v29 = vld [vmem:[%s1617_s3 + $0x48] sm:$0xff]   ;;  %327 = vst.msk [vmem:[#allocation2] sm:$0x1] %vm326_vm2, %v1344_v8  ;;  %vm927_vm3 = vcmask 16384   ;;  %p1273_p1 = scmp.lt.s32.totalorder %s1570_s15, %s1271_s21 }
  0x18   : > { %v328_v0 = vld [vmem:[%s313_s19] sm:$0xff]  ;;  %1119 = vmatprep.subr.bf16.mxu0 %v1344_v8  ;;  %1121 = vmatprep.mubr.msk.bf16.mxu0 %vm1345_vm1, %v1344_v8  ;;  %v1256_v31 = vld [vmem:[%s1617_s3 + $0x50] sm:$0xff]   ;;  %v1258_v33 = vld [vmem:[%s1617_s3 + $0x78] sm:$0xff]   ;;  %s930_s19 = scalar_lea.sflag [#allocation4], %s305_s23  ;;  %s1266_s27 = scalar_lea.vmem %s1570_s15, 16 }
  0x19   : > { %v330_v1 = vsel %vm329_vm0, %v328_v0, 0.0  ;;  %v1257_v32 = vld [vmem:[%s1617_s3 + $0x40] sm:$0xff]   ;;  %v1259_v35 = vld [vmem:[%s1617_s3 + $0x68] sm:$0xff]   ;;  %v1260_v37 = vld [vmem:[%s1617_s3 + $0x70] sm:$0xff]   ;;  %p1267_p12 = scmp.ne.s32.totalorder %s1570_s15, %s1266_s27  ;;  %p1274_p2 = scmp.lt.s32.totalorder %s1272_s22, %s1266_s27 }
  0x1a   : > { %331 = vadd.xlane.f32.xlu0 %v330_v1  ;;  %1128 = vmatpush3.bf16.msra.mxu1 %v1248_v10  ;;  %v1261_v38 = vld [vmem:[%s1617_s3 + $0x60] sm:$0xff]   ;;  %v1262_v41 = vld [vmem:[%s1619_s5 + $0x8] sm:$0xff]  }
  0x1b   : > { %1120 = vmatpush3.bf16.msra.mxu0 %v1249_v11  ;;  %1141 = vmatprep.subr.bf16.mxu1 %v1344_v8  ;;  %v1263_v42 = vld [vmem:[%s1619_s5] sm:$0xff]   ;;  %p1268_p13 = pnand %p1267_p12, %p1427_p4  ;;  %p1275_p3 = por %p1274_p2, %p1273_p1 }
  0x1c   : > { %1133 = vmatprep.subr.bf16.mxu0 %v1344_v8 }
  0x1d   : > { %p1269_p0 = pneg %p1268_p13 }
  0x1f   : > { %p1276_p5 = pnand %p1275_p3, %p1269_p0 }
  0xa3   : > { %v332_v2 = vpop.xlane.xlu0 %331 }
  0xa4   : > { %v334_v3 = vmul.f32 0.03125, %v332_v2 }
  0xa6   : > { %v335_v4 = vsub.f32 %v328_v0, %v334_v3 }
  0xa8   : > { %v336_v5 = vmul.f32 %v335_v4, %v335_v4 }
  0xaa   : > { %v337_v6 = vsel %vm329_vm0, %v336_v5, 0.0 }
  0xab   : > { %338 = vadd.xlane.f32.xlu0 %v337_v6 }
 0x134   : > { %v339_v12 = vpop.xlane.xlu0 %338 }
 0x135   : > { %v340_v13 = vmul.f32 0.03125, %v339_v12  ;;  %v855_v12 = vld [vmem:[#allocation2] sm:$0x1] }
 0x137   : > { %v341_v14 = vadd.f32 1e-05, %v340_v13 }
 0x139   : > { %1264 = vrsqrt.f32 %v341_v14 }
 0x146   : > { %v1265_v15 = vpop.eup %1264 }
 0x147   : > { %v343_v17 = vmul.f32 %v1265_v15, %v335_v4 }
 0x149   : > { %v351_v19 = vmul.f32 %v1030_v16, %v343_v17 }
 0x14b   : > { %v359_v20 = vadd.f32 %v1031_v18, %v351_v19 }
 0x14d   : > { %v360_v22 = vpack.c.bf16 %v359_v20, %v359_v20  ;;  %v863_v20 = vld [vmem:[%s1618_s4] sm:$0x1] }
 0x14f   : > { %1130 = vmatmul.mubr.msk.bf16.vlgmr.msra.gmra.mxu1 %vm329_vm0, %v360_v22  ;;  %v371_v24 = vshrl.u32 %v360_v22, 16  ;;  %v488_v30 = vrot.slane %v360_v22, 1  ;;  %v612_v36 = vrot.slane %v360_v22, 2  ;;  %v736_v40 = vrot.slane %v360_v22, 3 }
 0x150   : > { %1142 = vmatpush3.bf16.msra.mxu1 %v1250_v21  ;;  %1145 = vmatprep.mubr.msk.bf16.mxu1 %vm1345_vm1, %v1344_v8 }
 0x151   : > { %1122 = vmatmul.mubr.msk.bf16.vlgmr.msra.gmra.mxu0 %vm329_vm0, %v371_v24  ;;  %1143 = vmatprep.subr.bf16.mxu1 %v1344_v8  ;;  %v550_v28 = vrot.slane %v371_v24, 1  ;;  %v674_v34 = vrot.slane %v371_v24, 2  ;;  %v798_v39 = vrot.slane %v371_v24, 3 }
 0x152   : > { %1134 = vmatpush3.bf16.msra.mxu0 %v1251_v23  ;;  %1137 = vmatprep.mubr.msk.bf16.mxu0 %vm1345_vm1, %v1344_v8 }
 0x153   : > { %1135 = vmatprep.subr.bf16.mxu0 %v1344_v8 }
 0x154   : > { %1144 = vmatpush3.bf16.msra.mxu1 %v1252_v25  ;;  %v871_v25 = vld [vmem:[%s1620_s6] sm:$0x1] }
 0x155   : > { %1157 = vmatprep.subr.bf16.mxu1 %v1344_v8 }
 0x156   : > { %1136 = vmatpush3.bf16.msra.mxu0 %v1253_v26 }
 0x157   : > { %1146 = vmatmul.mubr.msk.bf16.vlgmr.msra.gmra.mxu1 %vm329_vm0, %v550_v28  ;;  %1149 = vmatprep.subr.bf16.mxu0 %v1344_v8 }
 0x158   : > { %1158 = vmatpush3.bf16.msra.mxu1 %v1254_v27  ;;  %1161 = vmatprep.mubr.msk.bf16.mxu1 %vm1345_vm1, %v1344_v8 }
 0x159   : > { %1138 = vmatmul.mubr.msk.bf16.vlgmr.msra.gmra.mxu0 %vm329_vm0, %v488_v30  ;;  %1159 = vmatprep.subr.bf16.mxu1 %v1344_v8 }
 0x15a   : > { %1150 = vmatpush3.bf16.msra.mxu0 %v1255_v29  ;;  %1153 = vmatprep.mubr.msk.bf16.mxu0 %vm1345_vm1, %v1344_v8 }
 0x15b   : > { %1151 = vmatprep.subr.bf16.mxu0 %v1344_v8 }
 0x15c   : > { %1160 = vmatpush3.bf16.msra.mxu1 %v1256_v31 }
 0x15d   : > { %1173 = vmatprep.subr.bf16.mxu1 %v1344_v8 }
 0x15e   : > { %1152 = vmatpush3.bf16.msra.mxu0 %v1257_v32 }
 0x15f   : > { %1162 = vmatmul.mubr.msk.bf16.vlgmr.msra.gmra.mxu1 %vm329_vm0, %v674_v34  ;;  %1165 = vmatprep.subr.bf16.mxu0 %v1344_v8 }
 0x160   : > { %1174 = vmatpush3.bf16.msra.mxu1 %v1258_v33  ;;  %1177 = vmatprep.mubr.msk.bf16.mxu1 %vm1345_vm1, %v1344_v8 }
 0x161   : > { %1154 = vmatmul.mubr.msk.bf16.vlgmr.msra.gmra.mxu0 %vm329_vm0, %v612_v36  ;;  %1175 = vmatprep.subr.bf16.mxu1 %v1344_v8 }
 0x162   : > { %1166 = vmatpush3.bf16.msra.mxu0 %v1259_v35  ;;  %1169 = vmatprep.mubr.msk.bf16.mxu0 %vm1345_vm1, %v1344_v8 }
 0x163   : > { %1167 = vmatprep.subr.bf16.mxu0 %v1344_v8 }
 0x164   : > { %1176 = vmatpush3.bf16.msra.mxu1 %v1260_v37 }
 0x166   : > { %1168 = vmatpush3.bf16.msra.mxu0 %v1261_v38 }
 0x167   : > { %1178 = vmatmul.mubr.msk.bf16.vlgmr.msra.gmra.mxu1 %vm329_vm0, %v798_v39  ;;  %1181 = vmatprep.subr.bf16.mxu0 %v1344_v8 }
 0x169   : > { %1170 = vmatmul.mubr.msk.bf16.vlgmr.msra.gmra.mxu0 %vm329_vm0, %v736_v40 }
 0x16a   : > { %1185 = vmatprep.mubr.msk.bf16.mxu0 %vm1345_vm1, %v1344_v8  ;;  %1182 = vmatpush3.bf16.msra.mxu0 %v1262_v41 }
 0x16b   : > { %1183 = vmatprep.subr.bf16.mxu0 %v1344_v8 }
 0x16e   : > { %1184 = vmatpush3.bf16.msra.mxu0 %v1263_v42 }
 0x20f   : > { %v476_v43 = vpop.f32.mrf.mxu1 }
 0x211   : > { %v422_v44 = vpop.f32.mrf.mxu0  ;;  %v1131_v45 = vpop.f32.mrf.mxu1 }
 0x212   : > { %v477_v56 = vadd.f32 %v476_v43, %v422_v44 }
 0x213   : > { %v1123_v46 = vpop.f32.mrf.mxu0  ;;  %v479_v47 = vpop.f32.mrf.mxu1 }
 0x215   : > { %v425_v48 = vpop.f32.mrf.mxu0  ;;  %v1132_v49 = vpop.f32.mrf.mxu1 }
 0x217   : > { %v1124_v50 = vpop.f32.mrf.mxu0  ;;  %v600_v51 = vpop.f32.mrf.mxu1 }
 0x219   : > { %v538_v52 = vpop.f32.mrf.mxu0  ;;  %v1147_v53 = vpop.f32.mrf.mxu1 }
 0x21a   : > { %v544_v59 = vadd.f32 %v538_v52, %v477_v56 }
 0x21b   : > { %v1139_v54 = vpop.f32.mrf.mxu0  ;;  %v603_v55 = vpop.f32.mrf.mxu1 }
 0x21c   : > { %v606_v0 = vadd.f32 %v600_v51, %v544_v59 }
 0x21d   : > { %v541_v57 = vpop.f32.mrf.mxu0  ;;  %v1148_v58 = vpop.f32.mrf.mxu1 }
 0x21f   : > { %v1140_v60 = vpop.f32.mrf.mxu0  ;;  %v724_v61 = vpop.f32.mrf.mxu1 }
 0x221   : > { %v662_v62 = vpop.f32.mrf.mxu0  ;;  %v1163_v63 = vpop.f32.mrf.mxu1 }
 0x222   : > { %v668_v3 = vadd.f32 %v662_v62, %v606_v0 }
 0x223   : > { %v1155_v1 = vpop.f32.mrf.mxu0  ;;  %v727_v2 = vpop.f32.mrf.mxu1 }
 0x224   : > { %v730_v8 = vadd.f32 %v724_v61, %v668_v3 }
 0x225   : > { %v665_v4 = vpop.f32.mrf.mxu0  ;;  %v1164_v5 = vpop.f32.mrf.mxu1 }
 0x227   : > { %v1156_v6 = vpop.f32.mrf.mxu0  ;;  %v848_v7 = vpop.f32.mrf.mxu1 }
 0x229   : > { %v786_v9 = vpop.f32.mrf.mxu0  ;;  %v1179_v10 = vpop.f32.mrf.mxu1 }
 0x22a   : > { %v792_v11 = vadd.f32 %v786_v9, %v730_v8 }
 0x22b   : > { %v1171_v13 = vpop.f32.mrf.mxu0  ;;  %v851_v14 = vpop.f32.mrf.mxu1 }
 0x22c   : > { %v854_v15 = vadd.f32 %v848_v7, %v792_v11 }
 0x22d   : > { %v789_v16 = vpop.f32.mrf.mxu0  ;;  %v1180_v17 = vpop.f32.mrf.mxu1 }
 0x22e   : > { %v856_v18 = vadd.f32 %v855_v12, %v854_v15 }
 0x22f   : > { %v1172_v19 = vpop.f32.mrf.mxu0 }
 0x230   : > { %858 = vst.msk [vmem:[#allocation2] sm:$0x1] %vm326_vm2, %v856_v18 }
 0x237   : > { %v862_v21 = vld [vmem:[#allocation2] sm:$0x1] }
 0x238   : > { %v864_v22 = vadd.f32 %v863_v20, %v862_v21 }
 0x23a   : > { %v865_v23 = vmax.f32 %v864_v22, 0.0 }
 0x23c   : > { %v866_v24 = vpack.c.bf16 %v865_v23, %v865_v23 }
 0x23e   : > { %1186 = vmatmul.mubr.msk.bf16.vlgmr.msra.gmra.mxu0 %vm329_vm0, %v866_v24 }
 0x2fe   : > { %v921_v26 = vpop.f32.mrf.mxu0 }
 0x2ff   : > { %v922_v27 = vadd.f32 %v921_v26, %v871_v25 }
 0x300   : > { %v1187_v28 = vpop.f32.mrf.mxu0 }
 0x301   : > { %928 = vst.msk [vmem:[%s306_s12] sm:$0x1] %vm927_vm3, %v922_v27 }
 0x302   : > { %v924_v29 = vpop.f32.mrf.mxu0 }
 0x303   : > { %1279 = shalt.err (!%p1276_p5)
}
 0x304   : > { %s1280_s30 = scalar_lea.hbm %s1568_s18, 16  ;;  %s1284_s10 = scalar_lea.hbm %s1621_s7, 32 }
 0x305   : > { %p1281_p6 = scmp.ne.s32.totalorder %s1568_s18, %s1280_s30  ;;  %p1285_p10 = scmp.lt.s32.totalorder %s1568_s18, %s1621_s7 }
 0x306   : > { %p1286_p11 = scmp.lt.s32.totalorder %s1284_s10, %s1280_s30 }
 0x307   : > { %p1282_p7 = pnand %p1281_p6, %p1427_p4 }
 0x308   : > { %p1287_p12 = por %p1286_p11, %p1285_p10 }
 0x309   : > { %p1283_p9 = pneg %p1282_p7 }
 0x30b   : > { %p1288_p13 = pnand %p1287_p12, %p1283_p9 }
 0x30d   : > { %1291 = shalt.err (!%p1288_p13)
}
 0x30e   : > { %1189 = dma.vmem_to_hbm [thread:$0]  (%p1427_p4), %s1570_s15, 16, %s1568_s18, %s930_s19   ;;  %v1188_v30 = vpop.f32.mrf.mxu0 }
 0x30f PF: > { %p1195_p0 = scmp.ge.s32.totalorder %s1342_s29, 2  ;;  %s954_s17 = sand.u32 1, %s1322_s24  }
 0x310   : > { %s955_s27 = scalar_lea.sflag [#allocation4], %s954_s17 }
 0x311   : > { %p1192_p1 = pnand %p1195_p0, %p1434_p8 }
 0x313   : > { %p1193_p2 = pneg %p1192_p1 }
 0x315   : > { %1317 = dma.done.wait (%p1193_p2), %s955_s27, 16  }
 0x316   : > { %1319 = vsyncadd (%p1193_p2), %s955_s27, 4294967280  ;;  %s20_s29 = sadd.s32 1, %s1342_s29   ;;  %s1624_s24 = smov %s1326_s25 }
 0x317   : > { %p17_p3 = scmp.ge.s32.totalorder %s20_s29, 4   ;;  %s1625_s25 = smov %s1330_s26 }
 0x318   : > { %s1626_s26 = smov %s1440_s14  ;;  %s1627_s27 = smov %s1338_s28 }
 0x319   : > { %s1628_s28 = smov %s1630_s9  ;;  %19 = sbr.rel (!%p17_p3) target bundleno = 4 (0x4), region = 101 }
 0x31e   :  { %959 = vsyncpa [#allocation4], 1 }
 0x31f   :  { %961 = vsyncpa [#allocation4 + $0x1], 1 }

</bundles_post_ra>
